<compile_context>
chip_gen: v5e
topology: v5e:2x2
jax: 0.10.0
libtpu: 0.0.40
codegen_flags: <defaults>
</compile_context>

<pallas_src>
import functools

import jax
import jax.numpy as jnp
from jax.experimental import pallas as pl
from jax.experimental.pallas import tpu as pltpu

# ----------------------------- model config ---------------------------------
VOCAB = 100
MAX_POS = 32
HIDDEN = 32
N_HEADS = 2
HEAD_DIM = HIDDEN // N_HEADS
FFN = 64
N_LAYERS = 2
NUM_LABELS = 3
PAD_LABELS = 128          # lane-dense padded classifier output width
LN_EPS = 1e-12


# ----------------------------- fused Pallas kernel ---------------------------
def _encoder_kernel(h_ref, bias_ref,
                    emb_g_ref, emb_b_ref,
                    wqkv_ref, bqkv_ref, wo_ref, bo_ref,
                    ln1g_ref, ln1b_ref,
                    w1_ref, b1_ref, w2_ref, b2_ref,
                    ln2g_ref, ln2b_ref,
                    pw_ref, pb_ref, cw_ref, cb_ref,
                    out_ref,
                    ctx_ref,
                    *, batch, seq):
    """Whole BERT-style encoder + pooler + classifier, VMEM-resident.

    h_ref:   (batch*seq, HIDDEN)   embedded tokens (pre-LayerNorm)
    bias_ref:(batch, seq)          additive attention-mask bias
    out_ref: (batch, PAD_LABELS)   padded logits (lane-dense store)
    ctx_ref: (batch*seq, HIDDEN)   VMEM scratch for per-head attention context
    """
    H, dH = HIDDEN, HEAD_DIM
    scale = 1.0 / (dH ** 0.5)

    def ln(x, g, b):
        mu = jnp.mean(x, axis=-1, keepdims=True)
        var = jnp.mean(jnp.square(x - mu), axis=-1, keepdims=True)
        return (x - mu) * jax.lax.rsqrt(var + LN_EPS) * g + b

    h = h_ref[...].astype(jnp.float32)             # (B*S, H)
    bias = bias_ref[...]                           # (B, S)
    h = ln(h, emb_g_ref[...], emb_b_ref[...])

    for l in range(N_LAYERS):
        # --- fused QKV projection: one (B*S, H) @ (H, 3H) matmul ---
        qkv = jnp.dot(h, wqkv_ref[l], preferred_element_type=jnp.float32) + bqkv_ref[l]

        # --- attention, statically unrolled over (batch, head) ---
        for b in range(batch):
            rows = slice(b * seq, (b + 1) * seq)
            bias_b = bias[b:b + 1, :]              # (1, S)
            for hd in range(N_HEADS):
                q_cols = slice(hd * dH, hd * dH + dH)
                k_cols = slice(H + hd * dH, H + hd * dH + dH)
                v_cols = slice(2 * H + hd * dH, 2 * H + hd * dH + dH)
                qb = qkv[rows, q_cols]             # (S, dH)
                kb = qkv[rows, k_cols]             # (S, dH)
                vb = qkv[rows, v_cols]             # (S, dH)

                s = jnp.dot(qb, kb.T, preferred_element_type=jnp.float32) * scale + bias_b
                s = s - jnp.max(s, axis=-1, keepdims=True)
                p = jnp.exp(s)
                p = p * pl.reciprocal(jnp.sum(p, axis=-1, keepdims=True), approx=True)
                ctx_ref[rows, q_cols] = jnp.dot(p, vb, preferred_element_type=jnp.float32)

        # --- output projection + residual + LN ---
        attn = jnp.dot(ctx_ref[...], wo_ref[l], preferred_element_type=jnp.float32) + bo_ref[l]
        h = ln(h + attn, ln1g_ref[l], ln1b_ref[l])

        # --- FFN + residual + LN ---
        ffn = jax.nn.gelu(jnp.dot(h, w1_ref[l], preferred_element_type=jnp.float32) + b1_ref[l])
        ffn = jnp.dot(ffn, w2_ref[l], preferred_element_type=jnp.float32) + b2_ref[l]
        h = ln(h + ffn, ln2g_ref[l], ln2b_ref[l])

    # --- pooler (CLS token) + classifier epilogue, lane-dense padded output ---
    for b in range(batch):
        cls_row = h[b * seq:b * seq + 1, :]                                        # (1, H)
        pooled = jnp.tanh(jnp.dot(cls_row, pw_ref[...],
                                  preferred_element_type=jnp.float32) + pb_ref[...])
        logits = jnp.dot(pooled, cw_ref[...],
                         preferred_element_type=jnp.float32) + cb_ref[...]         # (1, 128)
        out_ref[b:b + 1, :] = logits.astype(out_ref.dtype)


def encoder_pallas(h0, mask_bias, kp):
    """Single fused pallas_call over the whole encoder."""
    batch, seq = mask_bias.shape
    kernel = functools.partial(_encoder_kernel, batch=batch, seq=seq)
    args = (h0, mask_bias,
            kp["emb_ln_g"], kp["emb_ln_b"],
            kp["wqkv"], kp["bqkv"], kp["wo"], kp["bo"],
            kp["ln1_g"], kp["ln1_b"],
            kp["w1"], kp["b1"], kp["w2"], kp["b2"],
            kp["ln2_g"], kp["ln2_b"],
            kp["pool_w"], kp["pool_b"], kp["cls_w_pad"], kp["cls_b_pad"])
    return pl.pallas_call(
        kernel,
        out_shape=jax.ShapeDtypeStruct((batch, PAD_LABELS), jnp.float32),
        scratch_shapes=[pltpu.VMEM((batch * seq, HIDDEN), jnp.float32)],
    )(*args)


# ----------------------------- parameters ------------------------------------
def init_params(key):
    keys = iter(jax.random.split(key, 64))

    def dense(shape):
        return jax.random.normal(next(keys), shape, jnp.float32) * 0.02

    params = {
        "word_emb": dense((VOCAB, HIDDEN)),
        "pos_emb": dense((MAX_POS, HIDDEN)),
        "type_emb": dense((2, HIDDEN)),
        "emb_ln_g": jnp.ones((HIDDEN,), jnp.float32),
        "emb_ln_b": jnp.zeros((HIDDEN,), jnp.float32),
        "layers": [],
        "pool_w": dense((HIDDEN, HIDDEN)),
        "pool_b": jnp.zeros((HIDDEN,), jnp.float32),
        "cls_w": dense((HIDDEN, NUM_LABELS)),
        "cls_b": jnp.zeros((NUM_LABELS,), jnp.float32),
    }
    for _ in range(N_LAYERS):
        params["layers"].append({
            "wq": dense((HIDDEN, HIDDEN)), "bq": jnp.zeros((HIDDEN,), jnp.float32),
            "wk": dense((HIDDEN, HIDDEN)), "bk": jnp.zeros((HIDDEN,), jnp.float32),
            "wv": dense((HIDDEN, HIDDEN)), "bv": jnp.zeros((HIDDEN,), jnp.float32),
            "wo": dense((HIDDEN, HIDDEN)), "bo": jnp.zeros((HIDDEN,), jnp.float32),
            "ln1_g": jnp.ones((HIDDEN,), jnp.float32), "ln1_b": jnp.zeros((HIDDEN,), jnp.float32),
            "w1": dense((HIDDEN, FFN)), "b1": jnp.zeros((FFN,), jnp.float32),
            "w2": dense((FFN, HIDDEN)), "b2": jnp.zeros((HIDDEN,), jnp.float32),
            "ln2_g": jnp.ones((HIDDEN,), jnp.float32), "ln2_b": jnp.zeros((HIDDEN,), jnp.float32),
        })
    return params


def pack_params(params):
    """Fuse QKV, stack per-layer params, pad classifier to a 128-lane output."""
    layers = params["layers"]

    def stk(key, as_row=False):
        vals = [lay[key] for lay in layers]
        if as_row:
            vals = [v.reshape(1, -1) for v in vals]
        return jnp.stack(vals)

    wqkv = jnp.stack([jnp.concatenate([lay["wq"], lay["wk"], lay["wv"]], axis=1)
                      for lay in layers])                                         # (L, H, 3H)
    bqkv = jnp.stack([jnp.concatenate([lay["bq"], lay["bk"], lay["bv"]]).reshape(1, -1)
                      for lay in layers])                                         # (L, 1, 3H)

    cls_w_pad = jnp.zeros((HIDDEN, PAD_LABELS), jnp.float32).at[:, :NUM_LABELS].set(params["cls_w"])
    cls_b_pad = jnp.zeros((1, PAD_LABELS), jnp.float32).at[0, :NUM_LABELS].set(params["cls_b"])

    return {
        "word_emb": params["word_emb"],
        "pos_emb": params["pos_emb"],
        "type_emb": params["type_emb"],
        "emb_ln_g": params["emb_ln_g"].reshape(1, HIDDEN),
        "emb_ln_b": params["emb_ln_b"].reshape(1, HIDDEN),
        "wqkv": wqkv, "bqkv": bqkv,
        "wo": stk("wo"), "bo": stk("bo", as_row=True),
        "ln1_g": stk("ln1_g", as_row=True), "ln1_b": stk("ln1_b", as_row=True),
        "w1": stk("w1"), "b1": stk("b1", as_row=True),
        "w2": stk("w2"), "b2": stk("b2", as_row=True),
        "ln2_g": stk("ln2_g", as_row=True), "ln2_b": stk("ln2_b", as_row=True),
        "pool_w": params["pool_w"],
        "pool_b": params["pool_b"].reshape(1, HIDDEN),
        "cls_w_pad": cls_w_pad,
        "cls_b_pad": cls_b_pad,
    }


# ----------------------------- forward pass -----------------------------------
def model_forward(packed, input_ids, attention_mask, labels=None):
    B, S = input_ids.shape

    # Embedding gathers are glue; stay in plain JAX.
    h0 = (packed["word_emb"][input_ids]
          + packed["pos_emb"][:S][None, :, :]
          + packed["type_emb"][0][None, None, :]).reshape(B * S, HIDDEN)

    # Additive attention-mask bias (B, S).
    mask_bias = (1.0 - attention_mask.astype(jnp.float32)) * -1e9

    logits_pad = encoder_pallas(h0, mask_bias, packed)      # (B, 128)
    logits = logits_pad[:, :NUM_LABELS]                     # (B, NUM_LABELS)

    loss = None
    if labels is not None:
        # single-label classification -> cross-entropy (matches HF behaviour)
        logp = jax.nn.log_softmax(logits.astype(jnp.float32), axis=-1)
        loss = -jnp.mean(jnp.take_along_axis(logp, labels[:, None], axis=-1))
    return loss, logits


# ----------------------------- main -------------------------------------------
if __name__ == "__main__":
    key = jax.random.PRNGKey(0)
    pkey, ikey, lkey = jax.random.split(key, 3)

    params = init_params(pkey)
    packed = pack_params(params)

    B, S = 2, 8
    input_ids = jax.random.randint(ikey, (B, S), 0, VOCAB, dtype=jnp.int32)
    attention_mask = jnp.ones((B, S), jnp.int32).at[1, 6:].set(0)  # pad last 2 tokens of seq 1
    labels = jax.random.randint(lkey, (B,), 0, NUM_LABELS, dtype=jnp.int32)

    fwd = jax.jit(functools.partial(model_forward, packed))
    loss, logits = fwd(input_ids, attention_mask, labels)
    jax.block_until_ready((loss, logits))

    assert logits.shape == (B, NUM_LABELS)
    assert loss.shape == ()
    print("KERNEL_OK")
</pallas_src>

<mosaic_0001>
module attributes {stable_mosaic.version = 11 : i64} {
  func.func @_encoder_kernel(%arg0: memref<16x32xf32, #tpu.memory_space<vmem>>, %arg1: memref<2x8xf32, #tpu.memory_space<vmem>>, %arg2: memref<1x32xf32, #tpu.memory_space<vmem>>, %arg3: memref<1x32xf32, #tpu.memory_space<vmem>>, %arg4: memref<2x32x96xf32, #tpu.memory_space<vmem>>, %arg5: memref<2x1x96xf32, #tpu.memory_space<vmem>>, %arg6: memref<2x32x32xf32, #tpu.memory_space<vmem>>, %arg7: memref<2x1x32xf32, #tpu.memory_space<vmem>>, %arg8: memref<2x1x32xf32, #tpu.memory_space<vmem>>, %arg9: memref<2x1x32xf32, #tpu.memory_space<vmem>>, %arg10: memref<2x32x64xf32, #tpu.memory_space<vmem>>, %arg11: memref<2x1x64xf32, #tpu.memory_space<vmem>>, %arg12: memref<2x64x32xf32, #tpu.memory_space<vmem>>, %arg13: memref<2x1x32xf32, #tpu.memory_space<vmem>>, %arg14: memref<2x1x32xf32, #tpu.memory_space<vmem>>, %arg15: memref<2x1x32xf32, #tpu.memory_space<vmem>>, %arg16: memref<32x32xf32, #tpu.memory_space<vmem>>, %arg17: memref<1x32xf32, #tpu.memory_space<vmem>>, %arg18: memref<32x128xf32, #tpu.memory_space<vmem>>, %arg19: memref<1x128xf32, #tpu.memory_space<vmem>>, %arg20: memref<2x128xf32, #tpu.memory_space<vmem>>, %arg21: memref<16x32xf32, #tpu.memory_space<vmem>>) attributes {dimension_semantics = [], scalar_prefetch = 0 : i64, scratch_operands = 1 : i64, tpu.core_type = #tpu.core_type<tc>} {
    %c0 = arith.constant 0 : index
    %c0_0 = arith.constant 0 : index
    %0 = vector.load %arg0[%c0, %c0_0] : memref<16x32xf32, #tpu.memory_space<vmem>>, vector<16x32xf32>
    %c0_1 = arith.constant 0 : index
    %c0_2 = arith.constant 0 : index
    %1 = vector.load %arg1[%c0_1, %c0_2] : memref<2x8xf32, #tpu.memory_space<vmem>>, vector<2x8xf32>
    %c0_3 = arith.constant 0 : index
    %c0_4 = arith.constant 0 : index
    %2 = vector.load %arg2[%c0_3, %c0_4] : memref<1x32xf32, #tpu.memory_space<vmem>>, vector<1x32xf32>
    %c0_5 = arith.constant 0 : index
    %c0_6 = arith.constant 0 : index
    %3 = vector.load %arg3[%c0_5, %c0_6] : memref<1x32xf32, #tpu.memory_space<vmem>>, vector<1x32xf32>
    %cst = arith.constant dense<0.000000e+00> : vector<16xf32>
    %4 = vector.multi_reduction <add>, %0, %cst [1] : vector<16x32xf32> to vector<16xf32>
    %5 = vector.shape_cast %4 : vector<16xf32> to vector<16x1xf32>
    %cst_7 = arith.constant 3.200000e+01 : f32
    %6 = vector.broadcast %cst_7 : f32 to vector<16x1xf32>
    %7 = arith.divf %5, %6 : vector<16x1xf32>
    %8 = vector.broadcast %7 : vector<16x1xf32> to vector<16x32xf32>
    %9 = arith.subf %0, %8 : vector<16x32xf32>
    %10 = arith.mulf %9, %9 : vector<16x32xf32>
    %cst_8 = arith.constant dense<0.000000e+00> : vector<16xf32>
    %11 = vector.multi_reduction <add>, %10, %cst_8 [1] : vector<16x32xf32> to vector<16xf32>
    %12 = vector.shape_cast %11 : vector<16xf32> to vector<16x1xf32>
    %cst_9 = arith.constant 3.200000e+01 : f32
    %13 = vector.broadcast %cst_9 : f32 to vector<16x1xf32>
    %14 = arith.divf %12, %13 : vector<16x1xf32>
    %15 = vector.broadcast %7 : vector<16x1xf32> to vector<16x32xf32>
    %16 = arith.subf %0, %15 : vector<16x32xf32>
    %cst_10 = arith.constant 9.99999996E-13 : f32
    %17 = vector.broadcast %cst_10 : f32 to vector<16x1xf32>
    %18 = arith.addf %14, %17 : vector<16x1xf32>
    %19 = math.rsqrt %18 : vector<16x1xf32>
    %20 = vector.broadcast %19 : vector<16x1xf32> to vector<16x32xf32>
    %21 = arith.mulf %16, %20 : vector<16x32xf32>
    %22 = vector.broadcast %2 : vector<1x32xf32> to vector<16x32xf32>
    %23 = arith.mulf %21, %22 : vector<16x32xf32>
    %24 = vector.broadcast %3 : vector<1x32xf32> to vector<16x32xf32>
    %25 = arith.addf %23, %24 : vector<16x32xf32>
    %c0_11 = arith.constant 0 : index
    %c0_12 = arith.constant 0 : index
    %c0_13 = arith.constant 0 : index
    %26 = vector.load %arg4[%c0_11, %c0_12, %c0_13] : memref<2x32x96xf32, #tpu.memory_space<vmem>>, vector<1x32x96xf32>
    %27 = vector.shape_cast %26 : vector<1x32x96xf32> to vector<32x96xf32>
    %cst_14 = arith.constant dense<0.000000e+00> : vector<16x96xf32>
    %28 = tpu.matmul %25, %27, %cst_14 {dimension_numbers = #tpu.dot_dimension_numbers<[1], [0], [0], [1], [0, 0, 1, 1], [], []>} : vector<16x32xf32>, vector<32x96xf32>, vector<16x96xf32> -> vector<16x96xf32>
    %c0_15 = arith.constant 0 : index
    %c0_16 = arith.constant 0 : index
    %c0_17 = arith.constant 0 : index
    %29 = vector.load %arg5[%c0_15, %c0_16, %c0_17] : memref<2x1x96xf32, #tpu.memory_space<vmem>>, vector<1x1x96xf32>
    %30 = vector.shape_cast %29 : vector<1x1x96xf32> to vector<1x96xf32>
    %31 = vector.broadcast %30 : vector<1x96xf32> to vector<16x96xf32>
    %32 = arith.addf %28, %31 : vector<16x96xf32>
    %33 = vector.extract_strided_slice %1 {offsets = [0, 0], sizes = [1, 8], strides = [1, 1]} : vector<2x8xf32> to vector<1x8xf32>
    %34 = vector.extract_strided_slice %32 {offsets = [0, 0], sizes = [8, 16], strides = [1, 1]} : vector<16x96xf32> to vector<8x16xf32>
    %35 = vector.extract_strided_slice %32 {offsets = [0, 32], sizes = [8, 16], strides = [1, 1]} : vector<16x96xf32> to vector<8x16xf32>
    %36 = vector.extract_strided_slice %32 {offsets = [0, 64], sizes = [8, 16], strides = [1, 1]} : vector<16x96xf32> to vector<8x16xf32>
    %37 = tpu.transpose %35, [1, 0] : vector<8x16xf32> -> vector<16x8xf32>
    %cst_18 = arith.constant dense<0.000000e+00> : vector<8x8xf32>
    %38 = tpu.matmul %34, %37, %cst_18 {dimension_numbers = #tpu.dot_dimension_numbers<[1], [0], [0], [1], [0, 0, 1, 1], [], []>} : vector<8x16xf32>, vector<16x8xf32>, vector<8x8xf32> -> vector<8x8xf32>
    %cst_19 = arith.constant 2.500000e-01 : f32
    %39 = vector.broadcast %cst_19 : f32 to vector<8x8xf32>
    %40 = arith.mulf %38, %39 : vector<8x8xf32>
    %41 = vector.broadcast %33 : vector<1x8xf32> to vector<8x8xf32>
    %42 = arith.addf %40, %41 : vector<8x8xf32>
    %cst_20 = arith.constant dense<0xFF800000> : vector<8xf32>
    %43 = vector.multi_reduction <maximumf>, %42, %cst_20 [1] : vector<8x8xf32> to vector<8xf32>
    %44 = vector.shape_cast %43 : vector<8xf32> to vector<8x1xf32>
    %45 = vector.broadcast %44 : vector<8x1xf32> to vector<8x8xf32>
    %46 = arith.subf %42, %45 : vector<8x8xf32>
    %47 = math.exp %46 : vector<8x8xf32>
    %cst_21 = arith.constant dense<0.000000e+00> : vector<8xf32>
    %48 = vector.multi_reduction <add>, %47, %cst_21 [1] : vector<8x8xf32> to vector<8xf32>
    %49 = vector.shape_cast %48 : vector<8xf32> to vector<8x1xf32>
    %50 = tpu.reciprocal %49 {approx = true} : vector<8x1xf32> -> vector<8x1xf32>
    %51 = vector.broadcast %50 : vector<8x1xf32> to vector<8x8xf32>
    %52 = arith.mulf %47, %51 : vector<8x8xf32>
    %cst_22 = arith.constant dense<0.000000e+00> : vector<8x16xf32>
    %53 = tpu.matmul %52, %36, %cst_22 {dimension_numbers = #tpu.dot_dimension_numbers<[1], [0], [0], [1], [0, 0, 1, 1], [], []>} : vector<8x8xf32>, vector<8x16xf32>, vector<8x16xf32> -> vector<8x16xf32>
    %c0_23 = arith.constant 0 : index
    %c0_24 = arith.constant 0 : index
    %54 = vector.load %arg21[%c0_23, %c0_24] : memref<16x32xf32, #tpu.memory_space<vmem>>, vector<8x16xf32>
    tpu.vector_store %arg21[%c0_23, %c0_24], %53 {strides = array<i32>} : memref<16x32xf32, #tpu.memory_space<vmem>>, vector<8x16xf32>,
    %55 = vector.extract_strided_slice %32 {offsets = [0, 16], sizes = [8, 16], strides = [1, 1]} : vector<16x96xf32> to vector<8x16xf32>
    %56 = vector.extract_strided_slice %32 {offsets = [0, 48], sizes = [8, 16], strides = [1, 1]} : vector<16x96xf32> to vector<8x16xf32>
    %57 = vector.extract_strided_slice %32 {offsets = [0, 80], sizes = [8, 16], strides = [1, 1]} : vector<16x96xf32> to vector<8x16xf32>
    %58 = tpu.transpose %56, [1, 0] : vector<8x16xf32> -> vector<16x8xf32>
    %cst_25 = arith.constant dense<0.000000e+00> : vector<8x8xf32>
    %59 = tpu.matmul %55, %58, %cst_25 {dimension_numbers = #tpu.dot_dimension_numbers<[1], [0], [0], [1], [0, 0, 1, 1], [], []>} : vector<8x16xf32>, vector<16x8xf32>, vector<8x8xf32> -> vector<8x8xf32>
    %cst_26 = arith.constant 2.500000e-01 : f32
    %60 = vector.broadcast %cst_26 : f32 to vector<8x8xf32>
    %61 = arith.mulf %59, %60 : vector<8x8xf32>
    %62 = vector.broadcast %33 : vector<1x8xf32> to vector<8x8xf32>
    %63 = arith.addf %61, %62 : vector<8x8xf32>
    %cst_27 = arith.constant dense<0xFF800000> : vector<8xf32>
    %64 = vector.multi_reduction <maximumf>, %63, %cst_27 [1] : vector<8x8xf32> to vector<8xf32>
    %65 = vector.shape_cast %64 : vector<8xf32> to vector<8x1xf32>
    %66 = vector.broadcast %65 : vector<8x1xf32> to vector<8x8xf32>
    %67 = arith.subf %63, %66 : vector<8x8xf32>
    %68 = math.exp %67 : vector<8x8xf32>
    %cst_28 = arith.constant dense<0.000000e+00> : vector<8xf32>
    %69 = vector.multi_reduction <add>, %68, %cst_28 [1] : vector<8x8xf32> to vector<8xf32>
    %70 = vector.shape_cast %69 : vector<8xf32> to vector<8x1xf32>
    %71 = tpu.reciprocal %70 {approx = true} : vector<8x1xf32> -> vector<8x1xf32>
    %72 = vector.broadcast %71 : vector<8x1xf32> to vector<8x8xf32>
    %73 = arith.mulf %68, %72 : vector<8x8xf32>
    %cst_29 = arith.constant dense<0.000000e+00> : vector<8x16xf32>
    %74 = tpu.matmul %73, %57, %cst_29 {dimension_numbers = #tpu.dot_dimension_numbers<[1], [0], [0], [1], [0, 0, 1, 1], [], []>} : vector<8x8xf32>, vector<8x16xf32>, vector<8x16xf32> -> vector<8x16xf32>
    %c0_30 = arith.constant 0 : index
    %c16 = arith.constant 16 : index
    %75 = vector.load %arg21[%c0_30, %c16] : memref<16x32xf32, #tpu.memory_space<vmem>>, vector<8x16xf32>
    tpu.vector_store %arg21[%c0_30, %c16], %74 {strides = array<i32>} : memref<16x32xf32, #tpu.memory_space<vmem>>, vector<8x16xf32>,
    %76 = vector.extract_strided_slice %1 {offsets = [1, 0], sizes = [1, 8], strides = [1, 1]} : vector<2x8xf32> to vector<1x8xf32>
    %77 = vector.extract_strided_slice %32 {offsets = [8, 0], sizes = [8, 16], strides = [1, 1]} : vector<16x96xf32> to vector<8x16xf32>
    %78 = vector.extract_strided_slice %32 {offsets = [8, 32], sizes = [8, 16], strides = [1, 1]} : vector<16x96xf32> to vector<8x16xf32>
    %79 = vector.extract_strided_slice %32 {offsets = [8, 64], sizes = [8, 16], strides = [1, 1]} : vector<16x96xf32> to vector<8x16xf32>
    %80 = tpu.transpose %78, [1, 0] : vector<8x16xf32> -> vector<16x8xf32>
    %cst_31 = arith.constant dense<0.000000e+00> : vector<8x8xf32>
    %81 = tpu.matmul %77, %80, %cst_31 {dimension_numbers = #tpu.dot_dimension_numbers<[1], [0], [0], [1], [0, 0, 1, 1], [], []>} : vector<8x16xf32>, vector<16x8xf32>, vector<8x8xf32> -> vector<8x8xf32>
    %cst_32 = arith.constant 2.500000e-01 : f32
    %82 = vector.broadcast %cst_32 : f32 to vector<8x8xf32>
    %83 = arith.mulf %81, %82 : vector<8x8xf32>
    %84 = vector.broadcast %76 : vector<1x8xf32> to vector<8x8xf32>
    %85 = arith.addf %83, %84 : vector<8x8xf32>
    %cst_33 = arith.constant dense<0xFF800000> : vector<8xf32>
    %86 = vector.multi_reduction <maximumf>, %85, %cst_33 [1] : vector<8x8xf32> to vector<8xf32>
    %87 = vector.shape_cast %86 : vector<8xf32> to vector<8x1xf32>
    %88 = vector.broadcast %87 : vector<8x1xf32> to vector<8x8xf32>
    %89 = arith.subf %85, %88 : vector<8x8xf32>
    %90 = math.exp %89 : vector<8x8xf32>
    %cst_34 = arith.constant dense<0.000000e+00> : vector<8xf32>
    %91 = vector.multi_reduction <add>, %90, %cst_34 [1] : vector<8x8xf32> to vector<8xf32>
    %92 = vector.shape_cast %91 : vector<8xf32> to vector<8x1xf32>
    %93 = tpu.reciprocal %92 {approx = true} : vector<8x1xf32> -> vector<8x1xf32>
    %94 = vector.broadcast %93 : vector<8x1xf32> to vector<8x8xf32>
    %95 = arith.mulf %90, %94 : vector<8x8xf32>
    %cst_35 = arith.constant dense<0.000000e+00> : vector<8x16xf32>
    %96 = tpu.matmul %95, %79, %cst_35 {dimension_numbers = #tpu.dot_dimension_numbers<[1], [0], [0], [1], [0, 0, 1, 1], [], []>} : vector<8x8xf32>, vector<8x16xf32>, vector<8x16xf32> -> vector<8x16xf32>
    %c8 = arith.constant 8 : index
    %c0_36 = arith.constant 0 : index
    %97 = vector.load %arg21[%c8, %c0_36] : memref<16x32xf32, #tpu.memory_space<vmem>>, vector<8x16xf32>
    tpu.vector_store %arg21[%c8, %c0_36], %96 {strides = array<i32>} : memref<16x32xf32, #tpu.memory_space<vmem>>, vector<8x16xf32>,
    %98 = vector.extract_strided_slice %32 {offsets = [8, 16], sizes = [8, 16], strides = [1, 1]} : vector<16x96xf32> to vector<8x16xf32>
    %99 = vector.extract_strided_slice %32 {offsets = [8, 48], sizes = [8, 16], strides = [1, 1]} : vector<16x96xf32> to vector<8x16xf32>
    %100 = vector.extract_strided_slice %32 {offsets = [8, 80], sizes = [8, 16], strides = [1, 1]} : vector<16x96xf32> to vector<8x16xf32>
    %101 = tpu.transpose %99, [1, 0] : vector<8x16xf32> -> vector<16x8xf32>
    %cst_37 = arith.constant dense<0.000000e+00> : vector<8x8xf32>
    %102 = tpu.matmul %98, %101, %cst_37 {dimension_numbers = #tpu.dot_dimension_numbers<[1], [0], [0], [1], [0, 0, 1, 1], [], []>} : vector<8x16xf32>, vector<16x8xf32>, vector<8x8xf32> -> vector<8x8xf32>
    %cst_38 = arith.constant 2.500000e-01 : f32
    %103 = vector.broadcast %cst_38 : f32 to vector<8x8xf32>
    %104 = arith.mulf %102, %103 : vector<8x8xf32>
    %105 = vector.broadcast %76 : vector<1x8xf32> to vector<8x8xf32>
    %106 = arith.addf %104, %105 : vector<8x8xf32>
    %cst_39 = arith.constant dense<0xFF800000> : vector<8xf32>
    %107 = vector.multi_reduction <maximumf>, %106, %cst_39 [1] : vector<8x8xf32> to vector<8xf32>
    %108 = vector.shape_cast %107 : vector<8xf32> to vector<8x1xf32>
    %109 = vector.broadcast %108 : vector<8x1xf32> to vector<8x8xf32>
    %110 = arith.subf %106, %109 : vector<8x8xf32>
    %111 = math.exp %110 : vector<8x8xf32>
    %cst_40 = arith.constant dense<0.000000e+00> : vector<8xf32>
    %112 = vector.multi_reduction <add>, %111, %cst_40 [1] : vector<8x8xf32> to vector<8xf32>
    %113 = vector.shape_cast %112 : vector<8xf32> to vector<8x1xf32>
    %114 = tpu.reciprocal %113 {approx = true} : vector<8x1xf32> -> vector<8x1xf32>
    %115 = vector.broadcast %114 : vector<8x1xf32> to vector<8x8xf32>
    %116 = arith.mulf %111, %115 : vector<8x8xf32>
    %cst_41 = arith.constant dense<0.000000e+00> : vector<8x16xf32>
    %117 = tpu.matmul %116, %100, %cst_41 {dimension_numbers = #tpu.dot_dimension_numbers<[1], [0], [0], [1], [0, 0, 1, 1], [], []>} : vector<8x8xf32>, vector<8x16xf32>, vector<8x16xf32> -> vector<8x16xf32>
    %c8_42 = arith.constant 8 : index
    %c16_43 = arith.constant 16 : index
    %118 = vector.load %arg21[%c8_42, %c16_43] : memref<16x32xf32, #tpu.memory_space<vmem>>, vector<8x16xf32>
    tpu.vector_store %arg21[%c8_42, %c16_43], %117 {strides = array<i32>} : memref<16x32xf32, #tpu.memory_space<vmem>>, vector<8x16xf32>,
    %c0_44 = arith.constant 0 : index
    %c0_45 = arith.constant 0 : index
    %119 = vector.load %arg21[%c0_44, %c0_45] : memref<16x32xf32, #tpu.memory_space<vmem>>, vector<16x32xf32>
    %c0_46 = arith.constant 0 : index
    %c0_47 = arith.constant 0 : index
    %c0_48 = arith.constant 0 : index
    %120 = vector.load %arg6[%c0_46, %c0_47, %c0_48] : memref<2x32x32xf32, #tpu.memory_space<vmem>>, vector<1x32x32xf32>
    %121 = vector.shape_cast %120 : vector<1x32x32xf32> to vector<32x32xf32>
    %cst_49 = arith.constant dense<0.000000e+00> : vector<16x32xf32>
    %122 = tpu.matmul %119, %121, %cst_49 {dimension_numbers = #tpu.dot_dimension_numbers<[1], [0], [0], [1], [0, 0, 1, 1], [], []>} : vector<16x32xf32>, vector<32x32xf32>, vector<16x32xf32> -> vector<16x32xf32>
    %c0_50 = arith.constant 0 : index
    %c0_51 = arith.constant 0 : index
    %c0_52 = arith.constant 0 : index
    %123 = vector.load %arg7[%c0_50, %c0_51, %c0_52] : memref<2x1x32xf32, #tpu.memory_space<vmem>>, vector<1x1x32xf32>
    %124 = vector.shape_cast %123 : vector<1x1x32xf32> to vector<1x32xf32>
    %125 = vector.broadcast %124 : vector<1x32xf32> to vector<16x32xf32>
    %126 = arith.addf %122, %125 : vector<16x32xf32>
    %127 = arith.addf %25, %126 : vector<16x32xf32>
    %c0_53 = arith.constant 0 : index
    %c0_54 = arith.constant 0 : index
    %c0_55 = arith.constant 0 : index
    %128 = vector.load %arg8[%c0_53, %c0_54, %c0_55] : memref<2x1x32xf32, #tpu.memory_space<vmem>>, vector<1x1x32xf32>
    %129 = vector.shape_cast %128 : vector<1x1x32xf32> to vector<1x32xf32>
    %c0_56 = arith.constant 0 : index
    %c0_57 = arith.constant 0 : index
    %c0_58 = arith.constant 0 : index
    %130 = vector.load %arg9[%c0_56, %c0_57, %c0_58] : memref<2x1x32xf32, #tpu.memory_space<vmem>>, vector<1x1x32xf32>
    %131 = vector.shape_cast %130 : vector<1x1x32xf32> to vector<1x32xf32>
    %cst_59 = arith.constant dense<0.000000e+00> : vector<16xf32>
    %132 = vector.multi_reduction <add>, %127, %cst_59 [1] : vector<16x32xf32> to vector<16xf32>
    %133 = vector.shape_cast %132 : vector<16xf32> to vector<16x1xf32>
    %cst_60 = arith.constant 3.200000e+01 : f32
    %134 = vector.broadcast %cst_60 : f32 to vector<16x1xf32>
    %135 = arith.divf %133, %134 : vector<16x1xf32>
    %136 = vector.broadcast %135 : vector<16x1xf32> to vector<16x32xf32>
    %137 = arith.subf %127, %136 : vector<16x32xf32>
    %138 = arith.mulf %137, %137 : vector<16x32xf32>
    %cst_61 = arith.constant dense<0.000000e+00> : vector<16xf32>
    %139 = vector.multi_reduction <add>, %138, %cst_61 [1] : vector<16x32xf32> to vector<16xf32>
    %140 = vector.shape_cast %139 : vector<16xf32> to vector<16x1xf32>
    %cst_62 = arith.constant 3.200000e+01 : f32
    %141 = vector.broadcast %cst_62 : f32 to vector<16x1xf32>
    %142 = arith.divf %140, %141 : vector<16x1xf32>
    %143 = vector.broadcast %135 : vector<16x1xf32> to vector<16x32xf32>
    %144 = arith.subf %127, %143 : vector<16x32xf32>
    %cst_63 = arith.constant 9.99999996E-13 : f32
    %145 = vector.broadcast %cst_63 : f32 to vector<16x1xf32>
    %146 = arith.addf %142, %145 : vector<16x1xf32>
    %147 = math.rsqrt %146 : vector<16x1xf32>
    %148 = vector.broadcast %147 : vector<16x1xf32> to vector<16x32xf32>
    %149 = arith.mulf %144, %148 : vector<16x32xf32>
    %150 = vector.broadcast %129 : vector<1x32xf32> to vector<16x32xf32>
    %151 = arith.mulf %149, %150 : vector<16x32xf32>
    %152 = vector.broadcast %131 : vector<1x32xf32> to vector<16x32xf32>
    %153 = arith.addf %151, %152 : vector<16x32xf32>
    %c0_64 = arith.constant 0 : index
    %c0_65 = arith.constant 0 : index
    %c0_66 = arith.constant 0 : index
    %154 = vector.load %arg10[%c0_64, %c0_65, %c0_66] : memref<2x32x64xf32, #tpu.memory_space<vmem>>, vector<1x32x64xf32>
    %155 = vector.shape_cast %154 : vector<1x32x64xf32> to vector<32x64xf32>
    %cst_67 = arith.constant dense<0.000000e+00> : vector<16x64xf32>
    %156 = tpu.matmul %153, %155, %cst_67 {dimension_numbers = #tpu.dot_dimension_numbers<[1], [0], [0], [1], [0, 0, 1, 1], [], []>} : vector<16x32xf32>, vector<32x64xf32>, vector<16x64xf32> -> vector<16x64xf32>
    %c0_68 = arith.constant 0 : index
    %c0_69 = arith.constant 0 : index
    %c0_70 = arith.constant 0 : index
    %157 = vector.load %arg11[%c0_68, %c0_69, %c0_70] : memref<2x1x64xf32, #tpu.memory_space<vmem>>, vector<1x1x64xf32>
    %158 = vector.shape_cast %157 : vector<1x1x64xf32> to vector<1x64xf32>
    %159 = vector.broadcast %158 : vector<1x64xf32> to vector<16x64xf32>
    %160 = arith.addf %156, %159 : vector<16x64xf32>
    %161 = arith.mulf %160, %160 : vector<16x64xf32>
    %162 = arith.mulf %160, %161 : vector<16x64xf32>
    %cst_71 = arith.constant 4.471500e-02 : f32
    %163 = vector.broadcast %cst_71 : f32 to vector<16x64xf32>
    %164 = arith.mulf %163, %162 : vector<16x64xf32>
    %165 = arith.addf %160, %164 : vector<16x64xf32>
    %cst_72 = arith.constant 0.797884583 : f32
    %166 = vector.broadcast %cst_72 : f32 to vector<16x64xf32>
    %167 = arith.mulf %166, %165 : vector<16x64xf32>
    %168 = math.tanh %167 : vector<16x64xf32>
    %cst_73 = arith.constant 1.000000e+00 : f32
    %169 = vector.broadcast %cst_73 : f32 to vector<16x64xf32>
    %170 = arith.addf %169, %168 : vector<16x64xf32>
    %cst_74 = arith.constant 5.000000e-01 : f32
    %171 = vector.broadcast %cst_74 : f32 to vector<16x64xf32>
    %172 = arith.mulf %171, %170 : vector<16x64xf32>
    %173 = arith.mulf %160, %172 : vector<16x64xf32>
    %c0_75 = arith.constant 0 : index
    %c0_76 = arith.constant 0 : index
    %c0_77 = arith.constant 0 : index
    %174 = vector.load %arg12[%c0_75, %c0_76, %c0_77] : memref<2x64x32xf32, #tpu.memory_space<vmem>>, vector<1x64x32xf32>
    %175 = vector.shape_cast %174 : vector<1x64x32xf32> to vector<64x32xf32>
    %cst_78 = arith.constant dense<0.000000e+00> : vector<16x32xf32>
    %176 = tpu.matmul %173, %175, %cst_78 {dimension_numbers = #tpu.dot_dimension_numbers<[1], [0], [0], [1], [0, 0, 1, 1], [], []>} : vector<16x64xf32>, vector<64x32xf32>, vector<16x32xf32> -> vector<16x32xf32>
    %c0_79 = arith.constant 0 : index
    %c0_80 = arith.constant 0 : index
    %c0_81 = arith.constant 0 : index
    %177 = vector.load %arg13[%c0_79, %c0_80, %c0_81] : memref<2x1x32xf32, #tpu.memory_space<vmem>>, vector<1x1x32xf32>
    %178 = vector.shape_cast %177 : vector<1x1x32xf32> to vector<1x32xf32>
    %179 = vector.broadcast %178 : vector<1x32xf32> to vector<16x32xf32>
    %180 = arith.addf %176, %179 : vector<16x32xf32>
    %181 = arith.addf %153, %180 : vector<16x32xf32>
    %c0_82 = arith.constant 0 : index
    %c0_83 = arith.constant 0 : index
    %c0_84 = arith.constant 0 : index
    %182 = vector.load %arg14[%c0_82, %c0_83, %c0_84] : memref<2x1x32xf32, #tpu.memory_space<vmem>>, vector<1x1x32xf32>
    %183 = vector.shape_cast %182 : vector<1x1x32xf32> to vector<1x32xf32>
    %c0_85 = arith.constant 0 : index
    %c0_86 = arith.constant 0 : index
    %c0_87 = arith.constant 0 : index
    %184 = vector.load %arg15[%c0_85, %c0_86, %c0_87] : memref<2x1x32xf32, #tpu.memory_space<vmem>>, vector<1x1x32xf32>
    %185 = vector.shape_cast %184 : vector<1x1x32xf32> to vector<1x32xf32>
    %cst_88 = arith.constant dense<0.000000e+00> : vector<16xf32>
    %186 = vector.multi_reduction <add>, %181, %cst_88 [1] : vector<16x32xf32> to vector<16xf32>
    %187 = vector.shape_cast %186 : vector<16xf32> to vector<16x1xf32>
    %cst_89 = arith.constant 3.200000e+01 : f32
    %188 = vector.broadcast %cst_89 : f32 to vector<16x1xf32>
    %189 = arith.divf %187, %188 : vector<16x1xf32>
    %190 = vector.broadcast %189 : vector<16x1xf32> to vector<16x32xf32>
    %191 = arith.subf %181, %190 : vector<16x32xf32>
    %192 = arith.mulf %191, %191 : vector<16x32xf32>
    %cst_90 = arith.constant dense<0.000000e+00> : vector<16xf32>
    %193 = vector.multi_reduction <add>, %192, %cst_90 [1] : vector<16x32xf32> to vector<16xf32>
    %194 = vector.shape_cast %193 : vector<16xf32> to vector<16x1xf32>
    %cst_91 = arith.constant 3.200000e+01 : f32
    %195 = vector.broadcast %cst_91 : f32 to vector<16x1xf32>
    %196 = arith.divf %194, %195 : vector<16x1xf32>
    %197 = vector.broadcast %189 : vector<16x1xf32> to vector<16x32xf32>
    %198 = arith.subf %181, %197 : vector<16x32xf32>
    %cst_92 = arith.constant 9.99999996E-13 : f32
    %199 = vector.broadcast %cst_92 : f32 to vector<16x1xf32>
    %200 = arith.addf %196, %199 : vector<16x1xf32>
    %201 = math.rsqrt %200 : vector<16x1xf32>
    %202 = vector.broadcast %201 : vector<16x1xf32> to vector<16x32xf32>
    %203 = arith.mulf %198, %202 : vector<16x32xf32>
    %204 = vector.broadcast %183 : vector<1x32xf32> to vector<16x32xf32>
    %205 = arith.mulf %203, %204 : vector<16x32xf32>
    %206 = vector.broadcast %185 : vector<1x32xf32> to vector<16x32xf32>
    %207 = arith.addf %205, %206 : vector<16x32xf32>
    %c1 = arith.constant 1 : index
    %c0_93 = arith.constant 0 : index
    %c0_94 = arith.constant 0 : index
    %208 = vector.load %arg4[%c1, %c0_93, %c0_94] : memref<2x32x96xf32, #tpu.memory_space<vmem>>, vector<1x32x96xf32>
    %209 = vector.shape_cast %208 : vector<1x32x96xf32> to vector<32x96xf32>
    %cst_95 = arith.constant dense<0.000000e+00> : vector<16x96xf32>
    %210 = tpu.matmul %207, %209, %cst_95 {dimension_numbers = #tpu.dot_dimension_numbers<[1], [0], [0], [1], [0, 0, 1, 1], [], []>} : vector<16x32xf32>, vector<32x96xf32>, vector<16x96xf32> -> vector<16x96xf32>
    %c1_96 = arith.constant 1 : index
    %c0_97 = arith.constant 0 : index
    %c0_98 = arith.constant 0 : index
    %211 = vector.load %arg5[%c1_96, %c0_97, %c0_98] : memref<2x1x96xf32, #tpu.memory_space<vmem>>, vector<1x1x96xf32>
    %212 = vector.shape_cast %211 : vector<1x1x96xf32> to vector<1x96xf32>
    %213 = vector.broadcast %212 : vector<1x96xf32> to vector<16x96xf32>
    %214 = arith.addf %210, %213 : vector<16x96xf32>
    %215 = vector.extract_strided_slice %1 {offsets = [0, 0], sizes = [1, 8], strides = [1, 1]} : vector<2x8xf32> to vector<1x8xf32>
    %216 = vector.extract_strided_slice %214 {offsets = [0, 0], sizes = [8, 16], strides = [1, 1]} : vector<16x96xf32> to vector<8x16xf32>
    %217 = vector.extract_strided_slice %214 {offsets = [0, 32], sizes = [8, 16], strides = [1, 1]} : vector<16x96xf32> to vector<8x16xf32>
    %218 = vector.extract_strided_slice %214 {offsets = [0, 64], sizes = [8, 16], strides = [1, 1]} : vector<16x96xf32> to vector<8x16xf32>
    %219 = tpu.transpose %217, [1, 0] : vector<8x16xf32> -> vector<16x8xf32>
    %cst_99 = arith.constant dense<0.000000e+00> : vector<8x8xf32>
    %220 = tpu.matmul %216, %219, %cst_99 {dimension_numbers = #tpu.dot_dimension_numbers<[1], [0], [0], [1], [0, 0, 1, 1], [], []>} : vector<8x16xf32>, vector<16x8xf32>, vector<8x8xf32> -> vector<8x8xf32>
    %cst_100 = arith.constant 2.500000e-01 : f32
    %221 = vector.broadcast %cst_100 : f32 to vector<8x8xf32>
    %222 = arith.mulf %220, %221 : vector<8x8xf32>
    %223 = vector.broadcast %215 : vector<1x8xf32> to vector<8x8xf32>
    %224 = arith.addf %222, %223 : vector<8x8xf32>
    %cst_101 = arith.constant dense<0xFF800000> : vector<8xf32>
    %225 = vector.multi_reduction <maximumf>, %224, %cst_101 [1] : vector<8x8xf32> to vector<8xf32>
    %226 = vector.shape_cast %225 : vector<8xf32> to vector<8x1xf32>
    %227 = vector.broadcast %226 : vector<8x1xf32> to vector<8x8xf32>
    %228 = arith.subf %224, %227 : vector<8x8xf32>
    %229 = math.exp %228 : vector<8x8xf32>
    %cst_102 = arith.constant dense<0.000000e+00> : vector<8xf32>
    %230 = vector.multi_reduction <add>, %229, %cst_102 [1] : vector<8x8xf32> to vector<8xf32>
    %231 = vector.shape_cast %230 : vector<8xf32> to vector<8x1xf32>
    %232 = tpu.reciprocal %231 {approx = true} : vector<8x1xf32> -> vector<8x1xf32>
    %233 = vector.broadcast %232 : vector<8x1xf32> to vector<8x8xf32>
    %234 = arith.mulf %229, %233 : vector<8x8xf32>
    %cst_103 = arith.constant dense<0.000000e+00> : vector<8x16xf32>
    %235 = tpu.matmul %234, %218, %cst_103 {dimension_numbers = #tpu.dot_dimension_numbers<[1], [0], [0], [1], [0, 0, 1, 1], [], []>} : vector<8x8xf32>, vector<8x16xf32>, vector<8x16xf32> -> vector<8x16xf32>
    %c0_104 = arith.constant 0 : index
    %c0_105 = arith.constant 0 : index
    %236 = vector.load %arg21[%c0_104, %c0_105] : memref<16x32xf32, #tpu.memory_space<vmem>>, vector<8x16xf32>
    tpu.vector_store %arg21[%c0_104, %c0_105], %235 {strides = array<i32>} : memref<16x32xf32, #tpu.memory_space<vmem>>, vector<8x16xf32>,
    %237 = vector.extract_strided_slice %214 {offsets = [0, 16], sizes = [8, 16], strides = [1, 1]} : vector<16x96xf32> to vector<8x16xf32>
    %238 = vector.extract_strided_slice %214 {offsets = [0, 48], sizes = [8, 16], strides = [1, 1]} : vector<16x96xf32> to vector<8x16xf32>
    %239 = vector.extract_strided_slice %214 {offsets = [0, 80], sizes = [8, 16], strides = [1, 1]} : vector<16x96xf32> to vector<8x16xf32>
    %240 = tpu.transpose %238, [1, 0] : vector<8x16xf32> -> vector<16x8xf32>
    %cst_106 = arith.constant dense<0.000000e+00> : vector<8x8xf32>
    %241 = tpu.matmul %237, %240, %cst_106 {dimension_numbers = #tpu.dot_dimension_numbers<[1], [0], [0], [1], [0, 0, 1, 1], [], []>} : vector<8x16xf32>, vector<16x8xf32>, vector<8x8xf32> -> vector<8x8xf32>
    %cst_107 = arith.constant 2.500000e-01 : f32
    %242 = vector.broadcast %cst_107 : f32 to vector<8x8xf32>
    %243 = arith.mulf %241, %242 : vector<8x8xf32>
    %244 = vector.broadcast %215 : vector<1x8xf32> to vector<8x8xf32>
    %245 = arith.addf %243, %244 : vector<8x8xf32>
    %cst_108 = arith.constant dense<0xFF800000> : vector<8xf32>
    %246 = vector.multi_reduction <maximumf>, %245, %cst_108 [1] : vector<8x8xf32> to vector<8xf32>
    %247 = vector.shape_cast %246 : vector<8xf32> to vector<8x1xf32>
    %248 = vector.broadcast %247 : vector<8x1xf32> to vector<8x8xf32>
    %249 = arith.subf %245, %248 : vector<8x8xf32>
    %250 = math.exp %249 : vector<8x8xf32>
    %cst_109 = arith.constant dense<0.000000e+00> : vector<8xf32>
    %251 = vector.multi_reduction <add>, %250, %cst_109 [1] : vector<8x8xf32> to vector<8xf32>
    %252 = vector.shape_cast %251 : vector<8xf32> to vector<8x1xf32>
    %253 = tpu.reciprocal %252 {approx = true} : vector<8x1xf32> -> vector<8x1xf32>
    %254 = vector.broadcast %253 : vector<8x1xf32> to vector<8x8xf32>
    %255 = arith.mulf %250, %254 : vector<8x8xf32>
    %cst_110 = arith.constant dense<0.000000e+00> : vector<8x16xf32>
    %256 = tpu.matmul %255, %239, %cst_110 {dimension_numbers = #tpu.dot_dimension_numbers<[1], [0], [0], [1], [0, 0, 1, 1], [], []>} : vector<8x8xf32>, vector<8x16xf32>, vector<8x16xf32> -> vector<8x16xf32>
    %c0_111 = arith.constant 0 : index
    %c16_112 = arith.constant 16 : index
    %257 = vector.load %arg21[%c0_111, %c16_112] : memref<16x32xf32, #tpu.memory_space<vmem>>, vector<8x16xf32>
    tpu.vector_store %arg21[%c0_111, %c16_112], %256 {strides = array<i32>} : memref<16x32xf32, #tpu.memory_space<vmem>>, vector<8x16xf32>,
    %258 = vector.extract_strided_slice %1 {offsets = [1, 0], sizes = [1, 8], strides = [1, 1]} : vector<2x8xf32> to vector<1x8xf32>
    %259 = vector.extract_strided_slice %214 {offsets = [8, 0], sizes = [8, 16], strides = [1, 1]} : vector<16x96xf32> to vector<8x16xf32>
    %260 = vector.extract_strided_slice %214 {offsets = [8, 32], sizes = [8, 16], strides = [1, 1]} : vector<16x96xf32> to vector<8x16xf32>
    %261 = vector.extract_strided_slice %214 {offsets = [8, 64], sizes = [8, 16], strides = [1, 1]} : vector<16x96xf32> to vector<8x16xf32>
    %262 = tpu.transpose %260, [1, 0] : vector<8x16xf32> -> vector<16x8xf32>
    %cst_113 = arith.constant dense<0.000000e+00> : vector<8x8xf32>
    %263 = tpu.matmul %259, %262, %cst_113 {dimension_numbers = #tpu.dot_dimension_numbers<[1], [0], [0], [1], [0, 0, 1, 1], [], []>} : vector<8x16xf32>, vector<16x8xf32>, vector<8x8xf32> -> vector<8x8xf32>
    %cst_114 = arith.constant 2.500000e-01 : f32
    %264 = vector.broadcast %cst_114 : f32 to vector<8x8xf32>
    %265 = arith.mulf %263, %264 : vector<8x8xf32>
    %266 = vector.broadcast %258 : vector<1x8xf32> to vector<8x8xf32>
    %267 = arith.addf %265, %266 : vector<8x8xf32>
    %cst_115 = arith.constant dense<0xFF800000> : vector<8xf32>
    %268 = vector.multi_reduction <maximumf>, %267, %cst_115 [1] : vector<8x8xf32> to vector<8xf32>
    %269 = vector.shape_cast %268 : vector<8xf32> to vector<8x1xf32>
    %270 = vector.broadcast %269 : vector<8x1xf32> to vector<8x8xf32>
    %271 = arith.subf %267, %270 : vector<8x8xf32>
    %272 = math.exp %271 : vector<8x8xf32>
    %cst_116 = arith.constant dense<0.000000e+00> : vector<8xf32>
    %273 = vector.multi_reduction <add>, %272, %cst_116 [1] : vector<8x8xf32> to vector<8xf32>
    %274 = vector.shape_cast %273 : vector<8xf32> to vector<8x1xf32>
    %275 = tpu.reciprocal %274 {approx = true} : vector<8x1xf32> -> vector<8x1xf32>
    %276 = vector.broadcast %275 : vector<8x1xf32> to vector<8x8xf32>
    %277 = arith.mulf %272, %276 : vector<8x8xf32>
    %cst_117 = arith.constant dense<0.000000e+00> : vector<8x16xf32>
    %278 = tpu.matmul %277, %261, %cst_117 {dimension_numbers = #tpu.dot_dimension_numbers<[1], [0], [0], [1], [0, 0, 1, 1], [], []>} : vector<8x8xf32>, vector<8x16xf32>, vector<8x16xf32> -> vector<8x16xf32>
    %c8_118 = arith.constant 8 : index
    %c0_119 = arith.constant 0 : index
    %279 = vector.load %arg21[%c8_118, %c0_119] : memref<16x32xf32, #tpu.memory_space<vmem>>, vector<8x16xf32>
    tpu.vector_store %arg21[%c8_118, %c0_119], %278 {strides = array<i32>} : memref<16x32xf32, #tpu.memory_space<vmem>>, vector<8x16xf32>,
    %280 = vector.extract_strided_slice %214 {offsets = [8, 16], sizes = [8, 16], strides = [1, 1]} : vector<16x96xf32> to vector<8x16xf32>
    %281 = vector.extract_strided_slice %214 {offsets = [8, 48], sizes = [8, 16], strides = [1, 1]} : vector<16x96xf32> to vector<8x16xf32>
    %282 = vector.extract_strided_slice %214 {offsets = [8, 80], sizes = [8, 16], strides = [1, 1]} : vector<16x96xf32> to vector<8x16xf32>
    %283 = tpu.transpose %281, [1, 0] : vector<8x16xf32> -> vector<16x8xf32>
    %cst_120 = arith.constant dense<0.000000e+00> : vector<8x8xf32>
    %284 = tpu.matmul %280, %283, %cst_120 {dimension_numbers = #tpu.dot_dimension_numbers<[1], [0], [0], [1], [0, 0, 1, 1], [], []>} : vector<8x16xf32>, vector<16x8xf32>, vector<8x8xf32> -> vector<8x8xf32>
    %cst_121 = arith.constant 2.500000e-01 : f32
    %285 = vector.broadcast %cst_121 : f32 to vector<8x8xf32>
    %286 = arith.mulf %284, %285 : vector<8x8xf32>
    %287 = vector.broadcast %258 : vector<1x8xf32> to vector<8x8xf32>
    %288 = arith.addf %286, %287 : vector<8x8xf32>
    %cst_122 = arith.constant dense<0xFF800000> : vector<8xf32>
    %289 = vector.multi_reduction <maximumf>, %288, %cst_122 [1] : vector<8x8xf32> to vector<8xf32>
    %290 = vector.shape_cast %289 : vector<8xf32> to vector<8x1xf32>
    %291 = vector.broadcast %290 : vector<8x1xf32> to vector<8x8xf32>
    %292 = arith.subf %288, %291 : vector<8x8xf32>
    %293 = math.exp %292 : vector<8x8xf32>
    %cst_123 = arith.constant dense<0.000000e+00> : vector<8xf32>
    %294 = vector.multi_reduction <add>, %293, %cst_123 [1] : vector<8x8xf32> to vector<8xf32>
    %295 = vector.shape_cast %294 : vector<8xf32> to vector<8x1xf32>
    %296 = tpu.reciprocal %295 {approx = true} : vector<8x1xf32> -> vector<8x1xf32>
    %297 = vector.broadcast %296 : vector<8x1xf32> to vector<8x8xf32>
    %298 = arith.mulf %293, %297 : vector<8x8xf32>
    %cst_124 = arith.constant dense<0.000000e+00> : vector<8x16xf32>
    %299 = tpu.matmul %298, %282, %cst_124 {dimension_numbers = #tpu.dot_dimension_numbers<[1], [0], [0], [1], [0, 0, 1, 1], [], []>} : vector<8x8xf32>, vector<8x16xf32>, vector<8x16xf32> -> vector<8x16xf32>
    %c8_125 = arith.constant 8 : index
    %c16_126 = arith.constant 16 : index
    %300 = vector.load %arg21[%c8_125, %c16_126] : memref<16x32xf32, #tpu.memory_space<vmem>>, vector<8x16xf32>
    tpu.vector_store %arg21[%c8_125, %c16_126], %299 {strides = array<i32>} : memref<16x32xf32, #tpu.memory_space<vmem>>, vector<8x16xf32>,
    %c0_127 = arith.constant 0 : index
    %c0_128 = arith.constant 0 : index
    %301 = vector.load %arg21[%c0_127, %c0_128] : memref<16x32xf32, #tpu.memory_space<vmem>>, vector<16x32xf32>
    %c1_129 = arith.constant 1 : index
    %c0_130 = arith.constant 0 : index
    %c0_131 = arith.constant 0 : index
    %302 = vector.load %arg6[%c1_129, %c0_130, %c0_131] : memref<2x32x32xf32, #tpu.memory_space<vmem>>, vector<1x32x32xf32>
    %303 = vector.shape_cast %302 : vector<1x32x32xf32> to vector<32x32xf32>
    %cst_132 = arith.constant dense<0.000000e+00> : vector<16x32xf32>
    %304 = tpu.matmul %301, %303, %cst_132 {dimension_numbers = #tpu.dot_dimension_numbers<[1], [0], [0], [1], [0, 0, 1, 1], [], []>} : vector<16x32xf32>, vector<32x32xf32>, vector<16x32xf32> -> vector<16x32xf32>
    %c1_133 = arith.constant 1 : index
    %c0_134 = arith.constant 0 : index
    %c0_135 = arith.constant 0 : index
    %305 = vector.load %arg7[%c1_133, %c0_134, %c0_135] : memref<2x1x32xf32, #tpu.memory_space<vmem>>, vector<1x1x32xf32>
    %306 = vector.shape_cast %305 : vector<1x1x32xf32> to vector<1x32xf32>
    %307 = vector.broadcast %306 : vector<1x32xf32> to vector<16x32xf32>
    %308 = arith.addf %304, %307 : vector<16x32xf32>
    %309 = arith.addf %207, %308 : vector<16x32xf32>
    %c1_136 = arith.constant 1 : index
    %c0_137 = arith.constant 0 : index
    %c0_138 = arith.constant 0 : index
    %310 = vector.load %arg8[%c1_136, %c0_137, %c0_138] : memref<2x1x32xf32, #tpu.memory_space<vmem>>, vector<1x1x32xf32>
    %311 = vector.shape_cast %310 : vector<1x1x32xf32> to vector<1x32xf32>
    %c1_139 = arith.constant 1 : index
    %c0_140 = arith.constant 0 : index
    %c0_141 = arith.constant 0 : index
    %312 = vector.load %arg9[%c1_139, %c0_140, %c0_141] : memref<2x1x32xf32, #tpu.memory_space<vmem>>, vector<1x1x32xf32>
    %313 = vector.shape_cast %312 : vector<1x1x32xf32> to vector<1x32xf32>
    %cst_142 = arith.constant dense<0.000000e+00> : vector<16xf32>
    %314 = vector.multi_reduction <add>, %309, %cst_142 [1] : vector<16x32xf32> to vector<16xf32>
    %315 = vector.shape_cast %314 : vector<16xf32> to vector<16x1xf32>
    %cst_143 = arith.constant 3.200000e+01 : f32
    %316 = vector.broadcast %cst_143 : f32 to vector<16x1xf32>
    %317 = arith.divf %315, %316 : vector<16x1xf32>
    %318 = vector.broadcast %317 : vector<16x1xf32> to vector<16x32xf32>
    %319 = arith.subf %309, %318 : vector<16x32xf32>
    %320 = arith.mulf %319, %319 : vector<16x32xf32>
    %cst_144 = arith.constant dense<0.000000e+00> : vector<16xf32>
    %321 = vector.multi_reduction <add>, %320, %cst_144 [1] : vector<16x32xf32> to vector<16xf32>
    %322 = vector.shape_cast %321 : vector<16xf32> to vector<16x1xf32>
    %cst_145 = arith.constant 3.200000e+01 : f32
    %323 = vector.broadcast %cst_145 : f32 to vector<16x1xf32>
    %324 = arith.divf %322, %323 : vector<16x1xf32>
    %325 = vector.broadcast %317 : vector<16x1xf32> to vector<16x32xf32>
    %326 = arith.subf %309, %325 : vector<16x32xf32>
    %cst_146 = arith.constant 9.99999996E-13 : f32
    %327 = vector.broadcast %cst_146 : f32 to vector<16x1xf32>
    %328 = arith.addf %324, %327 : vector<16x1xf32>
    %329 = math.rsqrt %328 : vector<16x1xf32>
    %330 = vector.broadcast %329 : vector<16x1xf32> to vector<16x32xf32>
    %331 = arith.mulf %326, %330 : vector<16x32xf32>
    %332 = vector.broadcast %311 : vector<1x32xf32> to vector<16x32xf32>
    %333 = arith.mulf %331, %332 : vector<16x32xf32>
    %334 = vector.broadcast %313 : vector<1x32xf32> to vector<16x32xf32>
    %335 = arith.addf %333, %334 : vector<16x32xf32>
    %c1_147 = arith.constant 1 : index
    %c0_148 = arith.constant 0 : index
    %c0_149 = arith.constant 0 : index
    %336 = vector.load %arg10[%c1_147, %c0_148, %c0_149] : memref<2x32x64xf32, #tpu.memory_space<vmem>>, vector<1x32x64xf32>
    %337 = vector.shape_cast %336 : vector<1x32x64xf32> to vector<32x64xf32>
    %cst_150 = arith.constant dense<0.000000e+00> : vector<16x64xf32>
    %338 = tpu.matmul %335, %337, %cst_150 {dimension_numbers = #tpu.dot_dimension_numbers<[1], [0], [0], [1], [0, 0, 1, 1], [], []>} : vector<16x32xf32>, vector<32x64xf32>, vector<16x64xf32> -> vector<16x64xf32>
    %c1_151 = arith.constant 1 : index
    %c0_152 = arith.constant 0 : index
    %c0_153 = arith.constant 0 : index
    %339 = vector.load %arg11[%c1_151, %c0_152, %c0_153] : memref<2x1x64xf32, #tpu.memory_space<vmem>>, vector<1x1x64xf32>
    %340 = vector.shape_cast %339 : vector<1x1x64xf32> to vector<1x64xf32>
    %341 = vector.broadcast %340 : vector<1x64xf32> to vector<16x64xf32>
    %342 = arith.addf %338, %341 : vector<16x64xf32>
    %343 = arith.mulf %342, %342 : vector<16x64xf32>
    %344 = arith.mulf %342, %343 : vector<16x64xf32>
    %cst_154 = arith.constant 4.471500e-02 : f32
    %345 = vector.broadcast %cst_154 : f32 to vector<16x64xf32>
    %346 = arith.mulf %345, %344 : vector<16x64xf32>
    %347 = arith.addf %342, %346 : vector<16x64xf32>
    %cst_155 = arith.constant 0.797884583 : f32
    %348 = vector.broadcast %cst_155 : f32 to vector<16x64xf32>
    %349 = arith.mulf %348, %347 : vector<16x64xf32>
    %350 = math.tanh %349 : vector<16x64xf32>
    %cst_156 = arith.constant 1.000000e+00 : f32
    %351 = vector.broadcast %cst_156 : f32 to vector<16x64xf32>
    %352 = arith.addf %351, %350 : vector<16x64xf32>
    %cst_157 = arith.constant 5.000000e-01 : f32
    %353 = vector.broadcast %cst_157 : f32 to vector<16x64xf32>
    %354 = arith.mulf %353, %352 : vector<16x64xf32>
    %355 = arith.mulf %342, %354 : vector<16x64xf32>
    %c1_158 = arith.constant 1 : index
    %c0_159 = arith.constant 0 : index
    %c0_160 = arith.constant 0 : index
    %356 = vector.load %arg12[%c1_158, %c0_159, %c0_160] : memref<2x64x32xf32, #tpu.memory_space<vmem>>, vector<1x64x32xf32>
    %357 = vector.shape_cast %356 : vector<1x64x32xf32> to vector<64x32xf32>
    %cst_161 = arith.constant dense<0.000000e+00> : vector<16x32xf32>
    %358 = tpu.matmul %355, %357, %cst_161 {dimension_numbers = #tpu.dot_dimension_numbers<[1], [0], [0], [1], [0, 0, 1, 1], [], []>} : vector<16x64xf32>, vector<64x32xf32>, vector<16x32xf32> -> vector<16x32xf32>
    %c1_162 = arith.constant 1 : index
    %c0_163 = arith.constant 0 : index
    %c0_164 = arith.constant 0 : index
    %359 = vector.load %arg13[%c1_162, %c0_163, %c0_164] : memref<2x1x32xf32, #tpu.memory_space<vmem>>, vector<1x1x32xf32>
    %360 = vector.shape_cast %359 : vector<1x1x32xf32> to vector<1x32xf32>
    %361 = vector.broadcast %360 : vector<1x32xf32> to vector<16x32xf32>
    %362 = arith.addf %358, %361 : vector<16x32xf32>
    %363 = arith.addf %335, %362 : vector<16x32xf32>
    %c1_165 = arith.constant 1 : index
    %c0_166 = arith.constant 0 : index
    %c0_167 = arith.constant 0 : index
    %364 = vector.load %arg14[%c1_165, %c0_166, %c0_167] : memref<2x1x32xf32, #tpu.memory_space<vmem>>, vector<1x1x32xf32>
    %365 = vector.shape_cast %364 : vector<1x1x32xf32> to vector<1x32xf32>
    %c1_168 = arith.constant 1 : index
    %c0_169 = arith.constant 0 : index
    %c0_170 = arith.constant 0 : index
    %366 = vector.load %arg15[%c1_168, %c0_169, %c0_170] : memref<2x1x32xf32, #tpu.memory_space<vmem>>, vector<1x1x32xf32>
    %367 = vector.shape_cast %366 : vector<1x1x32xf32> to vector<1x32xf32>
    %cst_171 = arith.constant dense<0.000000e+00> : vector<16xf32>
    %368 = vector.multi_reduction <add>, %363, %cst_171 [1] : vector<16x32xf32> to vector<16xf32>
    %369 = vector.shape_cast %368 : vector<16xf32> to vector<16x1xf32>
    %cst_172 = arith.constant 3.200000e+01 : f32
    %370 = vector.broadcast %cst_172 : f32 to vector<16x1xf32>
    %371 = arith.divf %369, %370 : vector<16x1xf32>
    %372 = vector.broadcast %371 : vector<16x1xf32> to vector<16x32xf32>
    %373 = arith.subf %363, %372 : vector<16x32xf32>
    %374 = arith.mulf %373, %373 : vector<16x32xf32>
    %cst_173 = arith.constant dense<0.000000e+00> : vector<16xf32>
    %375 = vector.multi_reduction <add>, %374, %cst_173 [1] : vector<16x32xf32> to vector<16xf32>
    %376 = vector.shape_cast %375 : vector<16xf32> to vector<16x1xf32>
    %cst_174 = arith.constant 3.200000e+01 : f32
    %377 = vector.broadcast %cst_174 : f32 to vector<16x1xf32>
    %378 = arith.divf %376, %377 : vector<16x1xf32>
    %379 = vector.broadcast %371 : vector<16x1xf32> to vector<16x32xf32>
    %380 = arith.subf %363, %379 : vector<16x32xf32>
    %cst_175 = arith.constant 9.99999996E-13 : f32
    %381 = vector.broadcast %cst_175 : f32 to vector<16x1xf32>
    %382 = arith.addf %378, %381 : vector<16x1xf32>
    %383 = math.rsqrt %382 : vector<16x1xf32>
    %384 = vector.broadcast %383 : vector<16x1xf32> to vector<16x32xf32>
    %385 = arith.mulf %380, %384 : vector<16x32xf32>
    %386 = vector.broadcast %365 : vector<1x32xf32> to vector<16x32xf32>
    %387 = arith.mulf %385, %386 : vector<16x32xf32>
    %388 = vector.broadcast %367 : vector<1x32xf32> to vector<16x32xf32>
    %389 = arith.addf %387, %388 : vector<16x32xf32>
    %390 = vector.extract_strided_slice %389 {offsets = [0, 0], sizes = [1, 32], strides = [1, 1]} : vector<16x32xf32> to vector<1x32xf32>
    %c0_176 = arith.constant 0 : index
    %c0_177 = arith.constant 0 : index
    %391 = vector.load %arg16[%c0_176, %c0_177] : memref<32x32xf32, #tpu.memory_space<vmem>>, vector<32x32xf32>
    %cst_178 = arith.constant dense<0.000000e+00> : vector<1x32xf32>
    %392 = tpu.matmul %390, %391, %cst_178 {dimension_numbers = #tpu.dot_dimension_numbers<[1], [0], [0], [1], [0, 0, 1, 1], [], []>} : vector<1x32xf32>, vector<32x32xf32>, vector<1x32xf32> -> vector<1x32xf32>
    %c0_179 = arith.constant 0 : index
    %c0_180 = arith.constant 0 : index
    %393 = vector.load %arg17[%c0_179, %c0_180] : memref<1x32xf32, #tpu.memory_space<vmem>>, vector<1x32xf32>
    %394 = arith.addf %392, %393 : vector<1x32xf32>
    %395 = math.tanh %394 : vector<1x32xf32>
    %c0_181 = arith.constant 0 : index
    %c0_182 = arith.constant 0 : index
    %396 = vector.load %arg18[%c0_181, %c0_182] : memref<32x128xf32, #tpu.memory_space<vmem>>, vector<32x128xf32>
    %cst_183 = arith.constant dense<0.000000e+00> : vector<1x128xf32>
    %397 = tpu.matmul %395, %396, %cst_183 {dimension_numbers = #tpu.dot_dimension_numbers<[1], [0], [0], [1], [0, 0, 1, 1], [], []>} : vector<1x32xf32>, vector<32x128xf32>, vector<1x128xf32> -> vector<1x128xf32>
    %c0_184 = arith.constant 0 : index
    %c0_185 = arith.constant 0 : index
    %398 = vector.load %arg19[%c0_184, %c0_185] : memref<1x128xf32, #tpu.memory_space<vmem>>, vector<1x128xf32>
    %399 = arith.addf %397, %398 : vector<1x128xf32>
    %c0_186 = arith.constant 0 : index
    %c0_187 = arith.constant 0 : index
    %400 = vector.load %arg20[%c0_186, %c0_187] : memref<2x128xf32, #tpu.memory_space<vmem>>, vector<1x128xf32>
    tpu.vector_store %arg20[%c0_186, %c0_187], %399 {strides = array<i32>} : memref<2x128xf32, #tpu.memory_space<vmem>>, vector<1x128xf32>,
    %401 = vector.extract_strided_slice %389 {offsets = [8, 0], sizes = [1, 32], strides = [1, 1]} : vector<16x32xf32> to vector<1x32xf32>
    %c0_188 = arith.constant 0 : index
    %c0_189 = arith.constant 0 : index
    %402 = vector.load %arg16[%c0_188, %c0_189] : memref<32x32xf32, #tpu.memory_space<vmem>>, vector<32x32xf32>
    %cst_190 = arith.constant dense<0.000000e+00> : vector<1x32xf32>
    %403 = tpu.matmul %401, %402, %cst_190 {dimension_numbers = #tpu.dot_dimension_numbers<[1], [0], [0], [1], [0, 0, 1, 1], [], []>} : vector<1x32xf32>, vector<32x32xf32>, vector<1x32xf32> -> vector<1x32xf32>
    %c0_191 = arith.constant 0 : index
    %c0_192 = arith.constant 0 : index
    %404 = vector.load %arg17[%c0_191, %c0_192] : memref<1x32xf32, #tpu.memory_space<vmem>>, vector<1x32xf32>
    %405 = arith.addf %403, %404 : vector<1x32xf32>
    %406 = math.tanh %405 : vector<1x32xf32>
    %c0_193 = arith.constant 0 : index
    %c0_194 = arith.constant 0 : index
    %407 = vector.load %arg18[%c0_193, %c0_194] : memref<32x128xf32, #tpu.memory_space<vmem>>, vector<32x128xf32>
    %cst_195 = arith.constant dense<0.000000e+00> : vector<1x128xf32>
    %408 = tpu.matmul %406, %407, %cst_195 {dimension_numbers = #tpu.dot_dimension_numbers<[1], [0], [0], [1], [0, 0, 1, 1], [], []>} : vector<1x32xf32>, vector<32x128xf32>, vector<1x128xf32> -> vector<1x128xf32>
    %c0_196 = arith.constant 0 : index
    %c0_197 = arith.constant 0 : index
    %409 = vector.load %arg19[%c0_196, %c0_197] : memref<1x128xf32, #tpu.memory_space<vmem>>, vector<1x128xf32>
    %410 = arith.addf %408, %409 : vector<1x128xf32>
    %c1_198 = arith.constant 1 : index
    %c0_199 = arith.constant 0 : index
    %411 = vector.load %arg20[%c1_198, %c0_199] : memref<2x128xf32, #tpu.memory_space<vmem>>, vector<1x128xf32>
    tpu.vector_store %arg20[%c1_198, %c0_199], %410 {strides = array<i32>} : memref<2x128xf32, #tpu.memory_space<vmem>>, vector<1x128xf32>,
    return
  }
}

</mosaic_0001>

<bundles_post_ra>
// kernel: model_forward.1
= control target key start
LH: loop header
LB: loop body
LE: loop exit
PB: predicated region body
PF: predicated region fallthrough
CT: control target
= control target key end

     0   :  { %s2216_s0 = inlined_call_operand.vmem [shape: f32[16,32], index: 0, kind: input, shape index: {}]   ;;  %s2217_s1 = inlined_call_operand.vmem [shape: f32[2,8], index: 1, kind: input, shape index: {}]   ;;  %s2218_s2 = inlined_call_operand.vmem [shape: f32[1,32], index: 2, kind: input, shape index: {}]   ;;  %s2219_s3 = inlined_call_operand.vmem [shape: f32[1,32], index: 3, kind: input, shape index: {}, may-alias: {3,17}]   ;;  %s2220_s4 = inlined_call_operand.vmem [shape: f32[2,32,96], index: 4, kind: input, shape index: {}]   ;;  %s2221_s5 = inlined_call_operand.vmem [shape: f32[2,1,96], index: 5, kind: input, shape index: {}]   ;;  %s2222_s6 = inlined_call_operand.hbm [shape: f32[2,32,32], index: 6, kind: input, shape index: {}]   ;;  %s2223_s7 = inlined_call_operand.vmem [shape: f32[2,1,32], index: 7, kind: input, shape index: {}, may-alias: {7,9,13,15}]   ;;  %s2224_s8 = inlined_call_operand.vmem [shape: f32[2,1,32], index: 8, kind: input, shape index: {}, may-alias: {8,14}]   ;;  %s2225_s9 = inlined_call_operand.vmem [shape: f32[2,1,32], index: 9, kind: input, shape index: {}, may-alias: {7,9,13,15}]   ;;  %s2226_s10 = inlined_call_operand.hbm [shape: f32[2,32,64], index: 10, kind: input, shape index: {}]   ;;  %s2227_s11 = inlined_call_operand.vmem [shape: f32[2,1,64], index: 11, kind: input, shape index: {}]   ;;  %s2228_s12 = inlined_call_operand.vmem [shape: f32[2,64,32], index: 12, kind: input, shape index: {}]   ;;  %s2229_s13 = inlined_call_operand.vmem [shape: f32[2,1,32], index: 13, kind: input, shape index: {}, may-alias: {7,9,13,15}]   ;;  %s2230_s14 = inlined_call_operand.vmem [shape: f32[2,1,32], index: 14, kind: input, shape index: {}, may-alias: {8,14}]   ;;  %s2231_s15 = inlined_call_operand.vmem [shape: f32[2,1,32], index: 15, kind: input, shape index: {}, may-alias: {7,9,13,15}]   ;;  %s2232_s16 = inlined_call_operand.hbm [shape: f32[32,32], index: 16, kind: input, shape index: {}]   ;;  %s2233_s17 = inlined_call_operand.vmem [shape: f32[1,32], index: 17, kind: input, shape index: {}, may-alias: {3,17}]   ;;  %s2234_s18 = inlined_call_operand.hbm [shape: f32[32,128], index: 18, kind: input, shape index: {}]   ;;  %s2235_s19 = inlined_call_operand.vmem [shape: f32[1,128], index: 19, kind: input, shape index: {}]   ;;  %s2236_s20 = inlined_call_operand.vmem [shape: f32[2,128], index: 20, kind: output, shape index: {}]  }
   0x1   :  { %2239 = sst [smem:[#allocation13_spill]] %s2216_s0 }
   0x2   :  { %2240 = sst [smem:[#allocation14_spill]] %s2217_s1 }
   0x3   :  { %2241 = sst [smem:[#allocation15_spill]] %s2218_s2 }
   0x4   :  { %2242 = sst [smem:[#allocation16_spill]] %s2219_s3 }
   0x5   :  { %2243 = sst [smem:[#allocation17_spill]] %s2220_s4 }
   0x6   :  { %25 = vsyncpa [#allocation4], 0 }
   0x7   :  { %26 = vsyncpa [#allocation6], 0 }
   0x8   :  { %27 = vsyncpa [#allocation9], 0  ;;  %s63_s23 = sshll.u32 %s2226_s10, 4  ;;  %s1731_s24 = smov [#allocation5]   ;;  %s64_s23 = int_to_ptr.hbm [resolvable:$true] %s63_s23 }
   0x9   :  { %s65_s2 = sshll.u32 %s1731_s24, 4  ;;  %s44_s26 = sshll.u32 %s2222_s6, 4  ;;  %s66_s2 = int_to_ptr.vmem [resolvable:$true] %s65_s2  ;;  %s45_s26 = int_to_ptr.hbm [resolvable:$true] %s44_s26 }
   0xa   :  { %s1732_s27 = smov 128   ;;  %s1733_s28 = smov 8  }
   0xb   :  { %71 = dma.hbm_to_vmem [thread:$0]  %s64_s23, 1024, %s66_s2, [#allocation6], %s1732_s27, %s1732_s27, %s1733_s28  }
   0xc   :  { %s1734_s4 = smov [#allocation3]   ;;  %s86_s21 = sshll.u32 %s2232_s16, 4  ;;  %s87_s21 = int_to_ptr.hbm [resolvable:$true] %s86_s21 }
   0xd   :  { %s46_s29 = sshll.u32 %s1734_s4, 4  ;;  %s101_s22 = sshll.u32 %s2234_s18, 4  ;;  %s47_s29 = int_to_ptr.vmem [resolvable:$true] %s46_s29  ;;  %s102_s22 = int_to_ptr.hbm [resolvable:$true] %s101_s22 }
   0xe   :  { %52 = dma.hbm_to_vmem [thread:$0]  %s45_s26, 1024, %s47_s29, [#allocation4], %s1732_s27, %s1732_s27, %s1733_s28  }
   0xf   :  { %s1735_s24 = smov [#allocation7]   ;;  %s1736_s6 = smov [#allocation8]  }
  0x10   :  { %s88_s25 = sshll.u32 %s1735_s24, 4  ;;  %s103_s23 = sshll.u32 %s1736_s6, 4  ;;  %s89_s25 = int_to_ptr.vmem [resolvable:$true] %s88_s25  ;;  %s104_s23 = int_to_ptr.vmem [resolvable:$true] %s103_s23 }
  0x11   :  { %94 = dma.hbm_to_vmem [thread:$0]  %s87_s21, 512, %s89_s25, [#allocation6], %s1732_s27, %s1732_s27, %s1733_s28  }
  0x12   :  { %109 = dma.hbm_to_vmem [thread:$0]  %s102_s22, 512, %s104_s23, [#allocation9], %s1732_s27, %s1732_s27, %s1733_s28  }
  0x13   :  { %1725 = dma.done.wait [#allocation4], 1024  }
  0x14   :  { %1726 = vsyncadd [#allocation4], 4294966272 }
  0x15   :  { %1727 = dma.done.wait [#allocation6], 1536  }
  0x16   :  { %1728 = vsyncadd [#allocation6], 4294965760 }
  0x17   :  { %1729 = dma.done.wait [#allocation9], 512  }
  0x18   :  { %1730 = vsyncadd [#allocation9], 4294966784  ;;  %vm133_vm0 = vcmask 261120   ;;  %s2244_s3 = sld [smem:[#allocation13_spill]]  ;;  %v1737_v2 = vmov 32.0   ;;  %s1738_s18 = smov 80  }
  0x19   :  { %1563 = vrcp.f32 %v1737_v2  ;;  %s2245_s4 = sld [smem:[#allocation17_spill]]  ;;  %v1547_v47 = vld [vmem:[%s2221_s5] ss:$0 sm:$0xff]  ;;  %s1739_s26 = smov 96   ;;  %vm235_vm8 = vcmask 130048   ;;  %vm263_vm9 = vcmask 64512  }
  0x1a   :  { %s2246_s25 = sld [smem:[#allocation15_spill]]  ;;  %s1740_s27 = smov 112   ;;  %vm373_vm10 = vcmask 261248   ;;  %vm679_vm14 = vcmask 523264  }
  0x1b   :  { %s2247_s16 = sld [smem:[#allocation16_spill]]  ;;  %s1741_s0 = smov 64  }
  0x1c   :  { %s2248_s30 = sld [smem:[#allocation14_spill]]  ;;  %s1742_s21 = smov 48  }
  0x1d   :  { %s1743_s10 = smov 16  }
  0x1e   :  { %v128_v0 = vld [vmem:[%s2244_s3] sm:$0xff]  ;;  %v129_v3 = vld [vmem:[%s2244_s3 + $0x8] sm:$0xff] }
  0x1f   :  { %v134_v1 = vsel %vm133_vm0, %v128_v0, 0.0  ;;  %v137_v4 = vsel %vm133_vm0, %v129_v3, 0.0  ;;  %v1564_v5 = vpop.eup %1563  ;;  %v198_v16 = vld [vmem:[%s2245_s4 + $0x18] sm:$0xff]  ;;  %v197_v17 = vld [vmem:[%s2245_s4 + $0x10] sm:$0xff]  ;;  %v196_v18 = vld [vmem:[%s2245_s4 + $0x8] sm:$0xff] }
  0x20   :  { %135 = vadd.xlane.f32.xlu0 %v134_v1  ;;  %138 = vadd.xlane.f32.xlu1 %v137_v4  ;;  %v141_v6 = vmul.f32 32.0, %v1564_v5  ;;  %vm145_vm1 = vweird.f32 %v1564_v5  ;;  %v195_v19 = vld [vmem:[%s2245_s4] sm:$0xff] }
  0x21   :  { %221 = vmatpush.msra.mxu0 %v198_v16  ;;  %v1545_v34 = vld [vmem:[%s2246_s25] ss:$0 sm:$0xff] }
  0x22   :  { %v142_v7 = vsub.f32 1.0, %v141_v6  ;;  %v1546_v37 = vld [vmem:[%s2247_s16] ss:$0 sm:$0xff] }
  0x23   :  { %222 = vmatpush.msra.mxu0 %v197_v17  ;;  %v130_v59 = vld [vmem:[%s2248_s30] sm:$0x3] }
  0x24   :  { %v143_v8 = vmul.f32 %v1564_v5, %v142_v7  ;;  %v1916_v60 = vperm.slane %v130_v59, 0 }
  0x25   :  { %223 = vmatpush.msra.mxu0 %v196_v18 }
  0x26   :  { %v144_v9 = vadd.f32 %v1564_v5, %v143_v8 }
  0x27   :  { %224 = vmatpush.msra.mxu0 %v195_v19 }
  0x28   :  { %v1869_v10 = vsel %vm145_vm1, %v1564_v5, %v144_v9 }
  0x93   :  { %v136_v11 = vpop.xlane.xlu0 %135  ;;  %v139_v20 = vpop.xlane.xlu1 %138 }
  0x94   :  { %v147_v12 = vmul.f32 %v1869_v10, %v136_v11  ;;  %v148_v21 = vmul.f32 %v1869_v10, %v139_v20 }
  0x96   :  { %v149_v13 = vsub.f32 %v128_v0, %v147_v12  ;;  %v150_v23 = vsub.f32 %v129_v3, %v148_v21  ;;  %v1937_v21 = vperm.slane %v130_v59, 1 }
  0x98   :  { %v151_v14 = vmul.f32 %v149_v13, %v149_v13  ;;  %v152_v25 = vmul.f32 %v150_v23, %v150_v23 }
  0x9a   :  { %v153_v15 = vsel %vm133_vm0, %v151_v14, 0.0  ;;  %v156_v27 = vsel %vm133_vm0, %v152_v25, 0.0 }
  0x9b   :  { %154 = vadd.xlane.f32.xlu0 %v153_v15 }
  0xa3   :  { %157 = vadd.xlane.f32.xlu0 %v156_v27 }
 0x10e   :  { %v155_v22 = vpop.xlane.xlu0 %154 }
 0x10f   :  { %v159_v24 = vmul.f32 %v155_v22, %v1869_v10 }
 0x111   :  { %v161_v26 = vadd.f32 1e-12, %v159_v24 }
 0x113   :  { %1565 = vrsqrt.f32 %v161_v26  ;;  %vm169_vm3 = vweird.f32 %v161_v26 }
 0x116   :  { %v158_v40 = vpop.xlane.xlu0 %157 }
 0x117   :  { %v160_v41 = vmul.f32 %v158_v40, %v1869_v10 }
 0x119   :  { %v1566_v28 = vpop.eup %1565  ;;  %v162_v42 = vadd.f32 1e-12, %v160_v41 }
 0x11a   :  { %v164_v29 = vmul.f32 %v1566_v28, %v161_v26  ;;  %vm170_vm2 = vweird.f32 %v1566_v28 }
 0x11b   :  { %vm171_vm4 = vmor %vm169_vm3, %vm170_vm2  ;;  %1567 = vrsqrt.f32 %v162_v42  ;;  %vm179_vm5 = vweird.f32 %v162_v42 }
 0x11c   :  { %v165_v30 = vmul.f32 %v1566_v28, %v164_v29 }
 0x11e   :  { %v166_v31 = vmul.f32 0.5, %v165_v30 }
 0x120   :  { %v167_v32 = vsub.f32 1.5, %v166_v31 }
 0x121   :  { %v1568_v43 = vpop.eup %1567 }
 0x122   :  { %v168_v33 = vmul.f32 %v1566_v28, %v167_v32  ;;  %v174_v44 = vmul.f32 %v1568_v43, %v162_v42  ;;  %vm180_vm6 = vweird.f32 %v1568_v43 }
 0x123   :  { %vm181_vm7 = vmor %vm179_vm5, %vm180_vm6 }
 0x124   :  { %v172_v35 = vsel %vm171_vm4, %v1566_v28, %v168_v33  ;;  %v175_v45 = vmul.f32 %v1568_v43, %v174_v44 }
 0x125   :  { %v183_v36 = vmul.f32 %v172_v35, %v149_v13 }
 0x126   :  { %v176_v46 = vmul.f32 0.5, %v175_v45 }
 0x127   :  { %v188_v38 = vmul.f32 %v1545_v34, %v183_v36 }
 0x128   :  { %v177_v48 = vsub.f32 1.5, %v176_v46 }
 0x129   :  { %v1894_v39 = vadd.f32 %v1546_v37, %v188_v38 }
 0x12a   :  { %v178_v49 = vmul.f32 %v1568_v43, %v177_v48  ;;  %v519_v48 = vld [vmem:[#allocation3 + $0x10] sm:$0xff] }
 0x12b   :  { %1468 = vmatmul.msk.f32.vlgmr.msra.gmra.mxu0 %vm133_vm0, %v1894_v39 }
 0x12c   :  { %v182_v52 = vsel %vm181_vm7, %v1568_v43, %v178_v49  ;;  %v518_v49 = vld [vmem:[#allocation3 + $0x8] sm:$0xff] }
 0x12d   :  { %v184_v53 = vmul.f32 %v182_v52, %v150_v23 }
 0x12f   :  { %v189_v54 = vmul.f32 %v1545_v34, %v184_v53 }
 0x131   :  { %v1904_v55 = vadd.f32 %v1546_v37, %v189_v54 }
 0x133   :  { %1469 = vmatmul.msk.f32.gmra.mxu0 %vm133_vm0, %v1904_v55 }
 0x1a8   :  { %v226_v50 = vpop.f32.mrf.mxu0 }
 0x1a9   :  { %v227_v51 = vadd.f32 %v1547_v47, %v226_v50  ;;  %v517_v50 = vld [vmem:[#allocation3] sm:$0xff] }
 0x1ab   :  { %304 = vrot.lane.b32.xlu2 %v227_v51, %s1738_s18  ;;  %233 = vrot.lane.b32.xlu1 %v227_v51, %s1739_s26 }
 0x1b0   :  { %v229_v5 = vpop.f32.mrf.mxu0 }
 0x1b1   :  { %v1922_v6 = vadd.f32 %v1547_v47, %v229_v5  ;;  %v520_v47 = vld [vmem:[#allocation3 + $0x18] sm:$0xff] }
 0x1b3   :  { %302 = vrot.lane.b32.xlu2 %v227_v51, %s1740_s27 }
 0x205   :  { %v305_v56 = vpop.permute.xlu2 %304 }
 0x206   :  { %1473 = vmatpush.xpose.msk.msra.mxu3 %vm235_vm8, %v305_v56 }
 0x20d   :  { %v303_v57 = vpop.permute.xlu2 %302 }
 0x20e   :  { %1474 = vmatmul.msk.f32.vlgmr.msra.gmra.mxu3 %vm235_vm8, %v303_v57 }
 0x21d   :  { %v234_v58 = vpop.permute.xlu1 %233 }
 0x21e   :  { %1470 = vmatpush.xpose.msk.msra.mxu1 %vm235_vm8, %v234_v58 }
 0x221   :  { %1471 = vmatmul.msk.f32.vlgmr.msra.gmra.mxu1 %vm235_vm8, %v227_v51 }
 0x291   :  { %v327_v61 = vpop.f32.mrf.mxu3 }
 0x292   :  { %v330_v62 = vmul.f32 0.25, %v327_v61 }
 0x294   :  { %v331_v63 = vadd.f32 %v330_v62, %v1916_v60 }
 0x296   :  { %v332_v0 = vsel %vm263_vm9, %v331_v63, -inf }
 0x297   :  { %333 = vmax.xlane.f32.xlu0 %v332_v0 }
 0x29e   :  { %v257_v1 = vpop.f32.mrf.mxu1 }
 0x29f   :  { %v260_v2 = vmul.f32 0.25, %v257_v1  ;;  %v1962_v1 = vld [vmem:[%s2223_s7] ss:$0 sm:$0xff] }
 0x2a1   :  { %v262_v3 = vadd.f32 %v1916_v60, %v260_v2 }
 0x2a3   :  { %v264_v4 = vsel %vm263_vm9, %v262_v3, -inf }
 0x2a4   :  { %265 = vmax.xlane.f32.xlu2 %v264_v4 }
 0x2ab   :  { %376 = vrot.lane.b32.xlu0 %v1922_v6, %s1739_s26 }
 0x2bc   :  { %275 = vrot.lane.b32.xlu2 %v227_v51, %s1741_s0 }
 0x2c4   :  { %445 = vrot.lane.b32.xlu2 %v1922_v6, %s1738_s18 }
 0x2cc   :  { %443 = vrot.lane.b32.xlu2 %v1922_v6, %s1740_s27 }
 0x30a   :  { %v334_v7 = vpop.xlane.xlu0 %333 }
 0x30b   :  { %v335_v8 = vsub.f32 %v331_v63, %v334_v7 }
 0x30d   :  { %v336_v9 = vmul.f32 1.442695, %v335_v8 }
 0x30f   :  { %1569 = vpow2.f32 %v336_v9 }
 0x315   :  { %v1570_v11 = vpop.eup %1569 }
 0x316   :  { %v338_v12 = vsel %vm263_vm9, %v1570_v11, 0.0 }
 0x317   :  { %v266_v13 = vpop.xlane.xlu2 %265  ;;  %339 = vadd.xlane.f32.xlu0 %v338_v12 }
 0x318   :  { %v267_v14 = vsub.f32 %v262_v3, %v266_v13 }
 0x31a   :  { %v268_v15 = vmul.f32 1.442695, %v267_v14 }
 0x31c   :  { %1571 = vpow2.f32 %v268_v15 }
 0x31d   :  { %v377_v16 = vpop.permute.xlu0 %376 }
 0x31e   :  { %1476 = vmatpush.xpose.msk.msrb.mxu1 %vm235_vm8, %v377_v16  ;;  %v615_v16 = vld [vmem:[#allocation5 + $0x18] sm:$0xff] }
 0x31f   :  { %v276_v17 = vpop.permute.xlu2 %275  ;;  %638 = vmatpush.msrb.mxu0 %v615_v16 }
 0x320   :  { %296 = vmatpush.msra.mxu2 %v276_v17  ;;  %v613_v17 = vld [vmem:[#allocation5 + $0x8] sm:$0xff] }
 0x321   :  { %1477 = vmatmul.msk.f32.vlgmr.msrb.gmra.mxu1 %vm235_vm8, %v1922_v6 }
 0x322   :  { %v1572_v18 = vpop.eup %1571 }
 0x323   :  { %v270_v19 = vsel %vm263_vm9, %v1572_v18, 0.0 }
 0x324   :  { %271 = vadd.xlane.f32.xlu1 %v270_v19 }
 0x327   :  { %v446_v30 = vpop.permute.xlu2 %445 }
 0x32f   :  { %v444_v33 = vpop.permute.xlu2 %443 }
 0x33d   :  { %343 = vrot.lane.b32.xlu1 %v227_v51, %s1742_s21 }
 0x38a   :  { %v340_v27 = vpop.xlane.xlu0 %339 }
 0x397   :  { %v272_v20 = vpop.xlane.xlu1 %271 }
 0x398   :  { %1573 = vrcp.f32 %v272_v20 }
 0x399   :  { %1575 = vrcp.f32 %v340_v27 }
 0x39e   :  { %v1574_v22 = vpop.eup %1573  ;;  %v399_v23 = vpop.f32.mrf.mxu1 }
 0x39f   :  { %v402_v24 = vmul.f32 0.25, %v399_v23  ;;  %v274_v25 = vmul.f32 %v1574_v22, %v1572_v18  ;;  %v1576_v29 = vpop.eup %1575  ;;  %v612_v18 = vld [vmem:[#allocation5] sm:$0xff] }
 0x3a0   :  { %v342_v32 = vmul.f32 %v1576_v29, %v1570_v11 }
 0x3a1   :  { %1472 = vmatmul.msk.f32.vlgmr.msra.gmra.mxu2 %vm263_vm9, %v274_v25  ;;  %v404_v26 = vadd.f32 %v1937_v21, %v402_v24 }
 0x3a3   :  { %v405_v28 = vsel %vm263_vm9, %v404_v26, -inf }
 0x3a4   :  { %406 = vmax.xlane.f32.xlu0 %v405_v28 }
 0x3af   :  { %v344_v31 = vpop.permute.xlu1 %343 }
 0x3b0   :  { %364 = vmatpush.msrb.mxu2 %v344_v31  ;;  %v1977_v31 = vld [vmem:[%s2224_s8] ss:$0 sm:$0xff] }
 0x3b1   :  { %1475 = vmatmul.msk.f32.vlgmr.msrb.gmra.mxu2 %vm263_vm9, %v342_v32 }
 0x3b2   :  { %1479 = vmatpush.xpose.msk.msra.mxu2 %vm235_vm8, %v446_v30 }
 0x3b8   :  { %416 = vrot.lane.b32.xlu0 %v1922_v6, %s1741_s0 }
 0x3b9   :  { %1480 = vmatmul.msk.f32.vlgmr.msra.gmra.mxu2 %vm235_vm8, %v444_v33 }
 0x417   :  { %v407_v34 = vpop.xlane.xlu0 %406 }
 0x418   :  { %v408_v35 = vsub.f32 %v404_v26, %v407_v34  ;;  %v1982_v34 = vld [vmem:[%s2225_s9] ss:$0 sm:$0xff] }
 0x41a   :  { %v409_v36 = vmul.f32 1.442695, %v408_v35 }
 0x41c   :  { %1577 = vpow2.f32 %v409_v36 }
 0x422   :  { %v1578_v37 = vpop.eup %1577 }
 0x423   :  { %v411_v38 = vsel %vm263_vm9, %v1578_v37, 0.0 }
 0x424   :  { %v298_v40 = vpop.f32.mrf.mxu2  ;;  %412 = vadd.xlane.f32.xlu1 %v411_v38  ;;  %v673_v38 = vld [vmem:[%s2228_s12 + $0x30] sm:$0xff] }
 0x425   :  { %301 = vst.msk [vmem:[#allocation2] sm:$0xff] %vm235_vm8, %v298_v40  ;;  %v672_v40 = vld [vmem:[%s2228_s12 + $0x28] sm:$0xff] }
 0x42a   :  { %v417_v41 = vpop.permute.xlu0 %416 }
 0x42b   :  { %437 = vmatpush.msrb.mxu3 %v417_v41  ;;  %v671_v41 = vld [vmem:[%s2228_s12 + $0x20] sm:$0xff] }
 0x42d   :  { %543 = vmatpush.msra.mxu3 %v520_v47 }
 0x42f   :  { %544 = vmatpush.msra.mxu3 %v519_v48  ;;  %v1551_v48 = vld [vmem:[%s2227_s11] ss:$0 sm:$0xff] }
 0x431   :  { %545 = vmatpush.msra.mxu3 %v518_v49 }
 0x433   :  { %546 = vmatpush.msra.mxu3 %v517_v50 }
 0x434   :  { %v366_v42 = vpop.f32.mrf.mxu2 }
 0x435   :  { %370 = vrot.lane.b32.xlu0 %v366_v42, %s1743_s10  ;;  %v670_v42 = vld [vmem:[%s2228_s12 + $0x18] sm:$0xff] }
 0x43c   :  { %v468_v43 = vpop.f32.mrf.mxu2 }
 0x43d   :  { %v471_v44 = vmul.f32 0.25, %v468_v43  ;;  %v669_v43 = vld [vmem:[%s2228_s12 + $0x10] sm:$0xff] }
 0x43f   :  { %v472_v45 = vadd.f32 %v471_v44, %v1937_v21  ;;  %v668_v44 = vld [vmem:[%s2228_s12 + $0x8] sm:$0xff] }
 0x441   :  { %v473_v46 = vsel %vm263_vm9, %v472_v45, -inf }
 0x442   :  { %474 = vmax.xlane.f32.xlu2 %v473_v46 }
 0x45a   :  { %484 = vrot.lane.b32.xlu2 %v1922_v6, %s1742_s21 }
 0x497   :  { %v413_v51 = vpop.xlane.xlu1 %412 }
 0x498   :  { %1579 = vrcp.f32 %v413_v51 }
 0x49e   :  { %v1580_v52 = vpop.eup %1579 }
 0x49f   :  { %v415_v53 = vmul.f32 %v1580_v52, %v1578_v37  ;;  %v674_v37 = vld [vmem:[%s2228_s12 + $0x38] sm:$0xff] }
 0x4a0   :  { %694 = vmatpush.msrb.mxu2 %v674_v37 }
 0x4a1   :  { %1478 = vmatmul.msk.f32.vlgmr.msrb.gmra.mxu3 %vm263_vm9, %v415_v53 }
 0x4a2   :  { %695 = vmatpush.msrb.mxu2 %v673_v38 }
 0x4a4   :  { %696 = vmatpush.msrb.mxu2 %v672_v40 }
 0x4a6   :  { %697 = vmatpush.msrb.mxu2 %v671_v41 }
 0x4a7   :  { %v371_v54 = vpop.permute.xlu0 %370 }
 0x4a8   :  { %374 = vst.msk [vmem:[#allocation2] sm:$0xff] %vm373_vm10, %v371_v54  ;;  %698 = vmatpush.msrb.mxu2 %v670_v42 }
 0x4aa   :  { %699 = vmatpush.msrb.mxu2 %v669_v43 }
 0x4ac   :  { %700 = vmatpush.msrb.mxu2 %v668_v44 }
 0x4af   :  { %v515_v56 = vld [vmem:[#allocation2] sm:$0xff] }
 0x4b0   :  { %1482 = vmatmul.msk.f32.vlgmr.msra.gmra.mxu3 %vm133_vm0, %v515_v56 }
 0x4b5   :  { %v475_v57 = vpop.xlane.xlu2 %474 }
 0x4b6   :  { %v476_v58 = vsub.f32 %v472_v45, %v475_v57  ;;  %v667_v45 = vld [vmem:[%s2228_s12] sm:$0xff] }
 0x4b7   :  { %701 = vmatpush.msrb.mxu2 %v667_v45 }
 0x4b8   :  { %v477_v59 = vmul.f32 1.442695, %v476_v58 }
 0x4ba   :  { %1581 = vpow2.f32 %v477_v59 }
 0x4bd   :  { %v485_v61 = vpop.permute.xlu2 %484 }
 0x4be   :  { %505 = vmatpush.msra.mxu1 %v485_v61 }
 0x4c0   :  { %v1582_v62 = vpop.eup %1581 }
 0x4c1   :  { %v479_v63 = vsel %vm263_vm9, %v1582_v62, 0.0 }
 0x4c2   :  { %480 = vadd.xlane.f32.xlu0 %v479_v63 }
 0x524   :  { %v439_v0 = vpop.f32.mrf.mxu3 }
 0x525   :  { %442 = vst.msk [vmem:[#allocation2 + $0x8] sm:$0xff] %vm235_vm8, %v439_v0 }
 0x533   :  { %v548_v2 = vpop.f32.mrf.mxu3 }
 0x534   :  { %v549_v3 = vadd.f32 %v1962_v1, %v548_v2 }
 0x535   :  { %v481_v4 = vpop.xlane.xlu0 %480 }
 0x536   :  { %1583 = vrcp.f32 %v481_v4  ;;  %v554_v5 = vadd.f32 %v549_v3, %v1894_v39  ;;  %v614_v39 = vld [vmem:[#allocation5 + $0x10] sm:$0xff] }
 0x537   :  { %639 = vmatpush.msrb.mxu0 %v614_v39  ;;  %v2023_v4 = vld [vmem:[%s2229_s13] ss:$0 sm:$0xff] }
 0x538   :  { %v558_v6 = vsel %vm133_vm0, %v554_v5, 0.0 }
 0x539   :  { %559 = vadd.xlane.f32.xlu1 %v558_v6  ;;  %640 = vmatpush.msrb.mxu0 %v613_v17 }
 0x53b   :  { %641 = vmatpush.msrb.mxu0 %v612_v18 }
 0x53c   :  { %v1584_v7 = vpop.eup %1583 }
 0x53d   :  { %v483_v8 = vmul.f32 %v1584_v7, %v1582_v62 }
 0x53f   :  { %1481 = vmatmul.msk.f32.vlgmr.msra.gmra.mxu1 %vm263_vm9, %v483_v8 }
 0x5ac   :  { %v560_v9 = vpop.xlane.xlu1 %559 }
 0x5ad   :  { %v564_v11 = vmul.f32 %v560_v9, %v1869_v10 }
 0x5af   :  { %v566_v12 = vsub.f32 %v554_v5, %v564_v11 }
 0x5b1   :  { %v568_v13 = vmul.f32 %v566_v12, %v566_v12 }
 0x5b3   :  { %v570_v14 = vsel %vm133_vm0, %v568_v13, 0.0 }
 0x5b4   :  { %571 = vadd.xlane.f32.xlu2 %v570_v14 }
 0x5bc   :  { %v507_v15 = vpop.f32.mrf.mxu1 }
 0x5bd   :  { %511 = vrot.lane.b32.xlu1 %v507_v15, %s1743_s10 }
 0x627   :  { %v572_v19 = vpop.xlane.xlu2 %571 }
 0x628   :  { %v576_v20 = vmul.f32 %v572_v19, %v1869_v10 }
 0x62a   :  { %v578_v22 = vadd.f32 1e-12, %v576_v20 }
 0x62c   :  { %1585 = vrsqrt.f32 %v578_v22  ;;  %vm586_vm12 = vweird.f32 %v578_v22 }
 0x62f   :  { %v512_v23 = vpop.permute.xlu1 %511 }
 0x630   :  { %514 = vst.msk [vmem:[#allocation2 + $0x8] sm:$0xff] %vm373_vm10, %v512_v23 }
 0x632   :  { %v1586_v24 = vpop.eup %1585 }
 0x633   :  { %v581_v25 = vmul.f32 %v1586_v24, %v578_v22  ;;  %vm587_vm11 = vweird.f32 %v1586_v24 }
 0x634   :  { %vm588_vm13 = vmor %vm586_vm12, %vm587_vm11 }
 0x635   :  { %v582_v26 = vmul.f32 %v1586_v24, %v581_v25 }
 0x637   :  { %v583_v27 = vmul.f32 0.5, %v582_v26  ;;  %v516_v28 = vld [vmem:[#allocation2 + $0x8] sm:$0xff] }
 0x638   :  { %1483 = vmatmul.msk.f32.gmra.mxu3 %vm133_vm0, %v516_v28  ;;  %v1491_v28 = vld [vmem:[%s2245_s4 + $0x38] sm:$0xff] }
 0x639   :  { %v584_v29 = vsub.f32 1.5, %v583_v27  ;;  %795 = vmatpush.msrb.mxu1 %v1491_v28 }
 0x63b   :  { %v585_v30 = vmul.f32 %v1586_v24, %v584_v29 }
 0x63d   :  { %v589_v32 = vsel %vm588_vm13, %v1586_v24, %v585_v30 }
 0x63e   :  { %v600_v33 = vmul.f32 %v589_v32, %v566_v12  ;;  %v1489_v32 = vld [vmem:[%s2245_s4 + $0x28] sm:$0xff] }
 0x640   :  { %v605_v35 = vmul.f32 %v1977_v31, %v600_v33 }
 0x642   :  { %v610_v36 = vadd.f32 %v1982_v34, %v605_v35 }
 0x644   :  { %1484 = vmatmul.msk.f32.vlgmr.msrb.gmra.mxu0 %vm133_vm0, %v610_v36 }
 0x6bb   :  { %v551_v46 = vpop.f32.mrf.mxu3 }
 0x6bc   :  { %v552_v47 = vadd.f32 %v1962_v1, %v551_v46 }
 0x6be   :  { %v555_v49 = vadd.f32 %v552_v47, %v1904_v55 }
 0x6c0   :  { %v561_v50 = vsel %vm133_vm0, %v555_v49, 0.0 }
 0x6c1   :  { %v643_v51 = vpop.f32.mrf.mxu0  ;;  %562 = vadd.xlane.f32.xlu0 %v561_v50 }
 0x6c2   :  { %v644_v52 = vadd.f32 %v1551_v48, %v643_v51 }
 0x6c4   :  { %v649_v53 = vmul.f32 %v644_v52, %v644_v52 }
 0x6c6   :  { %v651_v54 = vmul.f32 %v649_v53, %v644_v52  ;;  %v1553_v53 = vld [vmem:[%s2230_s14] ss:$0 sm:$0xff] }
 0x6c8   :  { %v653_v56 = vmul.f32 0.044715, %v651_v54 }
 0x6ca   :  { %v655_v57 = vadd.f32 %v653_v56, %v644_v52 }
 0x6cc   :  { %v657_v58 = vmul.f32 0.7978846, %v655_v57  ;;  %v1554_v57 = vld [vmem:[%s2231_s15] ss:$0 sm:$0xff] }
 0x6ce   :  { %1587 = vtanh.f32 %v657_v58 }
 0x6d4   :  { %v1588_v59 = vpop.eup %1587 }
 0x6d5   :  { %v661_v61 = vadd.f32 1.0, %v1588_v59 }
 0x6d7   :  { %v663_v62 = vmul.f32 0.5, %v661_v61 }
 0x6d9   :  { %v665_v63 = vmul.f32 %v663_v62, %v644_v52 }
 0x6db   :  { %1486 = vmatmul.msk.f32.vlgmr.msrb.gmra.mxu2 %vm679_vm14, %v665_v63 }
 0x734   :  { %v563_v0 = vpop.xlane.xlu0 %562 }
 0x735   :  { %v565_v55 = vmul.f32 %v563_v0, %v1869_v10  ;;  %v1555_v0 = vld [vmem:[%s2221_s5 + $0x1] ss:$0 sm:$0xff] }
 0x737   :  { %v567_v1 = vsub.f32 %v555_v49, %v565_v55 }
 0x739   :  { %v569_v2 = vmul.f32 %v567_v1, %v567_v1 }
 0x73b   :  { %v573_v3 = vsel %vm133_vm0, %v569_v2, 0.0 }
 0x73c   :  { %574 = vadd.xlane.f32.xlu1 %v573_v3 }
 0x75e   :  { %v703_v5 = vpop.f32.mrf.mxu2 }
 0x75f   :  { %v704_v6 = vadd.f32 %v2023_v4, %v703_v5 }
 0x761   :  { %v709_v7 = vadd.f32 %v704_v6, %v610_v36 }
 0x763   :  { %v713_v8 = vsel %vm133_vm0, %v709_v7, 0.0 }
 0x764   :  { %714 = vadd.xlane.f32.xlu0 %v713_v8 }
 0x7af   :  { %v575_v9 = vpop.xlane.xlu1 %574 }
 0x7b0   :  { %v577_v11 = vmul.f32 %v575_v9, %v1869_v10 }
 0x7b2   :  { %v579_v12 = vadd.f32 1e-12, %v577_v11 }
 0x7b4   :  { %1589 = vrsqrt.f32 %v579_v12  ;;  %vm596_vm1 = vweird.f32 %v579_v12 }
 0x7ba   :  { %v1590_v13 = vpop.eup %1589 }
 0x7bb   :  { %v591_v14 = vmul.f32 %v1590_v13, %v579_v12  ;;  %vm597_vm15 = vweird.f32 %v1590_v13 }
 0x7bc   :  { %vm598_vm2 = vmor %vm596_vm1, %vm597_vm15 }
 0x7bd   :  { %v592_v15 = vmul.f32 %v1590_v13, %v591_v14 }
 0x7bf   :  { %v593_v16 = vmul.f32 0.5, %v592_v15 }
 0x7c1   :  { %v594_v39 = vsub.f32 1.5, %v593_v16 }
 0x7c3   :  { %v595_v17 = vmul.f32 %v1590_v13, %v594_v39 }
 0x7c5   :  { %v599_v18 = vsel %vm598_vm2, %v1590_v13, %v595_v17 }
 0x7c6   :  { %v601_v19 = vmul.f32 %v599_v18, %v567_v1 }
 0x7c8   :  { %v606_v20 = vmul.f32 %v1977_v31, %v601_v19  ;;  %v1490_v31 = vld [vmem:[%s2245_s4 + $0x30] sm:$0xff] }
 0x7c9   :  { %796 = vmatpush.msrb.mxu1 %v1490_v31 }
 0x7ca   :  { %v611_v22 = vadd.f32 %v1982_v34, %v606_v20  ;;  %v1488_v34 = vld [vmem:[%s2245_s4 + $0x20] sm:$0xff] }
 0x7cb   :  { %797 = vmatpush.msrb.mxu1 %v1489_v32 }
 0x7cc   :  { %1485 = vmatmul.msk.f32.gmra.mxu0 %vm133_vm0, %v611_v22 }
 0x7cd   :  { %798 = vmatpush.msrb.mxu1 %v1488_v34 }
 0x7d7   :  { %v715_v23 = vpop.xlane.xlu0 %714 }
 0x7d8   :  { %v719_v24 = vmul.f32 %v715_v23, %v1869_v10 }
 0x7da   :  { %v721_v25 = vsub.f32 %v709_v7, %v719_v24 }
 0x7dc   :  { %v723_v26 = vmul.f32 %v721_v25, %v721_v25 }
 0x7de   :  { %v725_v27 = vsel %vm133_vm0, %v723_v26, 0.0 }
 0x7df   :  { %726 = vadd.xlane.f32.xlu0 %v725_v27 }
 0x849   :  { %v646_v29 = vpop.f32.mrf.mxu0 }
 0x84a   :  { %v647_v30 = vadd.f32 %v1551_v48, %v646_v29 }
 0x84c   :  { %v650_v33 = vmul.f32 %v647_v30, %v647_v30 }
 0x84e   :  { %v652_v35 = vmul.f32 %v650_v33, %v647_v30 }
 0x850   :  { %v654_v36 = vmul.f32 0.044715, %v652_v35 }
 0x852   :  { %v656_v37 = vadd.f32 %v654_v36, %v647_v30  ;;  %v727_v38 = vpop.xlane.xlu0 %726 }
 0x853   :  { %v731_v40 = vmul.f32 %v727_v38, %v1869_v10 }
 0x854   :  { %v658_v41 = vmul.f32 0.7978846, %v656_v37 }
 0x855   :  { %v733_v42 = vadd.f32 1e-12, %v731_v40 }
 0x856   :  { %1591 = vtanh.f32 %v658_v41 }
 0x857   :  { %1593 = vrsqrt.f32 %v733_v42  ;;  %vm741_vm4 = vweird.f32 %v733_v42 }
 0x85c   :  { %v1592_v43 = vpop.eup %1591 }
 0x85d   :  { %v1594_v44 = vpop.eup %1593  ;;  %v662_v45 = vadd.f32 1.0, %v1592_v43 }
 0x85e   :  { %v736_v46 = vmul.f32 %v1594_v44, %v733_v42  ;;  %vm742_vm3 = vweird.f32 %v1594_v44 }
 0x85f   :  { %v664_v47 = vmul.f32 0.5, %v662_v45  ;;  %vm743_vm5 = vmor %vm741_vm4, %vm742_vm3 }
 0x860   :  { %v737_v48 = vmul.f32 %v1594_v44, %v736_v46 }
 0x861   :  { %v666_v49 = vmul.f32 %v664_v47, %v647_v30 }
 0x862   :  { %v738_v50 = vmul.f32 0.5, %v737_v48 }
 0x863   :  { %1487 = vmatmul.msk.f32.gmra.mxu2 %vm679_vm14, %v666_v49 }
 0x864   :  { %v739_v51 = vsub.f32 1.5, %v738_v50 }
 0x866   :  { %v740_v52 = vmul.f32 %v1594_v44, %v739_v51 }
 0x868   :  { %v744_v54 = vsel %vm743_vm5, %v1594_v44, %v740_v52 }
 0x869   :  { %v755_v56 = vmul.f32 %v744_v54, %v721_v25 }
 0x86b   :  { %v760_v58 = vmul.f32 %v1553_v53, %v755_v56 }
 0x86d   :  { %v2053_v59 = vadd.f32 %v1554_v57, %v760_v58 }
 0x86f   :  { %1493 = vmatmul.msk.f32.vlgmr.msrb.gmra.mxu1 %vm133_vm0, %v2053_v59 }
 0x8e6   :  { %v706_v61 = vpop.f32.mrf.mxu2 }
 0x8e7   :  { %v707_v62 = vadd.f32 %v2023_v4, %v706_v61 }
 0x8e9   :  { %v710_v63 = vadd.f32 %v707_v62, %v611_v22 }
 0x8eb   :  { %v716_v55 = vsel %vm133_vm0, %v710_v63, 0.0 }
 0x8ec   :  { %717 = vadd.xlane.f32.xlu0 %v716_v55  ;;  %v800_v1 = vpop.f32.mrf.mxu1 }
 0x8ed   :  { %v2062_v2 = vadd.f32 %v1555_v0, %v800_v1 }
 0x8ef   :  { %875 = vrot.lane.b32.xlu1 %v2062_v2, %s1738_s18  ;;  %807 = vrot.lane.b32.xlu2 %v2062_v2, %s1739_s26 }
 0x8f7   :  { %846 = vrot.lane.b32.xlu1 %v2062_v2, %s1741_s0 }
 0x949   :  { %v808_v3 = vpop.permute.xlu2 %807 }
 0x94a   :  { %1495 = vmatpush.xpose.msk.msrb.mxu3 %vm235_vm8, %v808_v3 }
 0x94d   :  { %1496 = vmatmul.msk.f32.vlgmr.msrb.gmra.mxu3 %vm235_vm8, %v2062_v2 }
 0x95f   :  { %v718_v4 = vpop.xlane.xlu0 %717 }
 0x960   :  { %v720_v5 = vmul.f32 %v718_v4, %v1869_v10 }
 0x961   :  { %v876_v6 = vpop.permute.xlu1 %875 }
 0x962   :  { %v722_v7 = vsub.f32 %v710_v63, %v720_v5  ;;  %1498 = vmatpush.xpose.msk.msra.mxu1 %vm235_vm8, %v876_v6 }
 0x964   :  { %v724_v8 = vmul.f32 %v722_v7, %v722_v7 }
 0x966   :  { %v728_v9 = vsel %vm133_vm0, %v724_v8, 0.0 }
 0x967   :  { %729 = vadd.xlane.f32.xlu0 %v728_v9 }
 0x969   :  { %v847_v11 = vpop.permute.xlu1 %846 }
 0x96a   :  { %867 = vmatpush.msra.mxu0 %v847_v11 }
 0x9d0   :  { %v830_v12 = vpop.f32.mrf.mxu3 }
 0x9d1   :  { %v833_v13 = vmul.f32 0.25, %v830_v12 }
 0x9d3   :  { %v834_v14 = vadd.f32 %v833_v13, %v1916_v60 }
 0x9d5   :  { %v835_v15 = vsel %vm263_vm9, %v834_v14, -inf }
 0x9d6   :  { %836 = vmax.xlane.f32.xlu0 %v835_v15 }
 0x9da   :  { %v730_v16 = vpop.xlane.xlu0 %729 }
 0x9db   :  { %v732_v39 = vmul.f32 %v730_v16, %v1869_v10 }
 0x9dd   :  { %v734_v17 = vadd.f32 1e-12, %v732_v39 }
 0x9df   :  { %1595 = vrsqrt.f32 %v734_v17  ;;  %vm751_vm7 = vweird.f32 %v734_v17 }
 0x9e5   :  { %v1596_v18 = vpop.eup %1595 }
 0x9e6   :  { %v746_v19 = vmul.f32 %v1596_v18, %v734_v17  ;;  %vm752_vm6 = vweird.f32 %v1596_v18 }
 0x9e7   :  { %vm753_vm11 = vmor %vm751_vm7, %vm752_vm6 }
 0x9e8   :  { %v747_v20 = vmul.f32 %v1596_v18, %v746_v19 }
 0x9ea   :  { %v748_v22 = vmul.f32 0.5, %v747_v20  ;;  %873 = vrot.lane.b32.xlu0 %v2062_v2, %s1740_s27 }
 0x9ec   :  { %v749_v23 = vsub.f32 1.5, %v748_v22  ;;  %v1090_v22 = vld [vmem:[#allocation3 + $0x38] sm:$0xff] }
 0x9ee   :  { %v750_v24 = vmul.f32 %v1596_v18, %v749_v23  ;;  %v1089_v23 = vld [vmem:[#allocation3 + $0x30] sm:$0xff] }
 0x9f0   :  { %v754_v25 = vsel %vm753_vm11, %v1596_v18, %v750_v24  ;;  %v1088_v24 = vld [vmem:[#allocation3 + $0x28] sm:$0xff] }
 0x9f1   :  { %v756_v26 = vmul.f32 %v754_v25, %v722_v7  ;;  %v1087_v25 = vld [vmem:[#allocation3 + $0x20] sm:$0xff] }
 0x9f3   :  { %v761_v27 = vmul.f32 %v1553_v53, %v756_v26 }
 0x9f5   :  { %v2081_v28 = vadd.f32 %v1554_v57, %v761_v27 }
 0x9f7   :  { %1494 = vmatmul.msk.f32.gmra.mxu1 %vm133_vm0, %v2081_v28 }
 0xa49   :  { %v837_v29 = vpop.xlane.xlu0 %836 }
 0xa4a   :  { %v838_v30 = vsub.f32 %v834_v14, %v837_v29 }
 0xa4c   :  { %v839_v31 = vmul.f32 1.442695, %v838_v30 }
 0xa4e   :  { %1597 = vpow2.f32 %v839_v31  ;;  %v1556_v31 = vld [vmem:[%s2223_s7 + $0x1] ss:$0 sm:$0xff] }
 0xa54   :  { %v1598_v32 = vpop.eup %1597 }
 0xa55   :  { %v841_v33 = vsel %vm263_vm9, %v1598_v32, 0.0 }
 0xa56   :  { %842 = vadd.xlane.f32.xlu0 %v841_v33 }
 0xa5c   :  { %v874_v34 = vpop.permute.xlu0 %873 }
 0xa5d   :  { %1499 = vmatmul.msk.f32.vlgmr.msra.gmra.mxu1 %vm235_vm8, %v874_v34 }
 0xa74   :  { %v803_v35 = vpop.f32.mrf.mxu1 }
 0xa75   :  { %v2087_v36 = vadd.f32 %v1555_v0, %v803_v35 }
 0xa77   :  { %1014 = vrot.lane.b32.xlu2 %v2087_v36, %s1738_s18 }
 0xa7f   :  { %1012 = vrot.lane.b32.xlu2 %v2087_v36, %s1740_s27 }
 0xa87   :  { %946 = vrot.lane.b32.xlu2 %v2087_v36, %s1739_s26 }
 0xac9   :  { %v843_v37 = vpop.xlane.xlu0 %842 }
 0xaca   :  { %1599 = vrcp.f32 %v843_v37 }
 0xad0   :  { %v1600_v38 = vpop.eup %1599 }
 0xad1   :  { %v845_v40 = vmul.f32 %v1600_v38, %v1598_v32  ;;  %v1015_v41 = vpop.permute.xlu2 %1014 }
 0xad2   :  { %1504 = vmatpush.xpose.msk.msrb.mxu1 %vm235_vm8, %v1015_v41 }
 0xad3   :  { %1497 = vmatmul.msk.f32.vlgmr.msra.gmra.mxu0 %vm263_vm9, %v845_v40 }
 0xad9   :  { %v1013_v42 = vpop.permute.xlu2 %1012 }
 0xada   :  { %v898_v43 = vpop.f32.mrf.mxu1  ;;  %1505 = vmatmul.msk.f32.vlgmr.msrb.gmra.mxu1 %vm235_vm8, %v1013_v42 }
 0xadb   :  { %v901_v44 = vmul.f32 0.25, %v898_v43 }
 0xadd   :  { %v902_v45 = vadd.f32 %v901_v44, %v1916_v60 }
 0xadf   :  { %v903_v46 = vsel %vm263_vm9, %v902_v45, -inf }
 0xae0   :  { %904 = vmax.xlane.f32.xlu1 %v903_v46 }
 0xae1   :  { %v947_v47 = vpop.permute.xlu2 %946 }
 0xae2   :  { %1501 = vmatpush.xpose.msk.msrb.mxu0 %vm235_vm8, %v947_v47  ;;  %v1189_v47 = vld [vmem:[#allocation5 + $0x38] sm:$0xff] }
 0xae5   :  { %1502 = vmatmul.msk.f32.vlgmr.msrb.gmra.mxu0 %vm235_vm8, %v2087_v36 }
 0xae6   :  { %1114 = vmatpush.msra.mxu0 %v1090_v22 }
 0xae8   :  { %1115 = vmatpush.msra.mxu0 %v1089_v23 }
 0xaea   :  { %1116 = vmatpush.msra.mxu0 %v1088_v24 }
 0xaec   :  { %1117 = vmatpush.msra.mxu0 %v1087_v25 }
 0xb50   :  { %v869_v48 = vpop.f32.mrf.mxu0 }
 0xb51   :  { %872 = vst.msk [vmem:[#allocation2] sm:$0xff] %vm235_vm8, %v869_v48  ;;  %v1188_v48 = vld [vmem:[#allocation5 + $0x30] sm:$0xff] }
 0xb53   :  { %v905_v49 = vpop.xlane.xlu1 %904 }
 0xb54   :  { %v906_v50 = vsub.f32 %v902_v45, %v905_v49  ;;  %v1187_v49 = vld [vmem:[#allocation5 + $0x28] sm:$0xff] }
 0xb56   :  { %v907_v51 = vmul.f32 1.442695, %v906_v50  ;;  %v1186_v50 = vld [vmem:[#allocation5 + $0x20] sm:$0xff] }
 0xb57   :  { %v1037_v52 = vpop.f32.mrf.mxu1 }
 0xb58   :  { %1601 = vpow2.f32 %v907_v51  ;;  %v1040_v53 = vmul.f32 0.25, %v1037_v52 }
 0xb5a   :  { %v1041_v60 = vadd.f32 %v1040_v53, %v1937_v21 }
 0xb5c   :  { %v1042_v54 = vsel %vm263_vm9, %v1041_v60, -inf }
 0xb5d   :  { %1043 = vmax.xlane.f32.xlu2 %v1042_v54 }
 0xb5e   :  { %v1602_v56 = vpop.eup %1601 }
 0xb5f   :  { %v909_v57 = vsel %vm263_vm9, %v1602_v56, 0.0 }
 0xb60   :  { %910 = vadd.xlane.f32.xlu0 %v909_v57 }
 0xb62   :  { %v969_v58 = vpop.f32.mrf.mxu0 }
 0xb63   :  { %v972_v61 = vmul.f32 0.25, %v969_v58 }
 0xb65   :  { %v973_v62 = vadd.f32 %v972_v61, %v1937_v21  ;;  %v1557_v61 = vld [vmem:[%s2224_s8 + $0x1] ss:$0 sm:$0xff] }
 0xb67   :  { %v974_v63 = vsel %vm263_vm9, %v973_v62, -inf }
 0xb68   :  { %975 = vmax.xlane.f32.xlu0 %v974_v63 }
 0xb75   :  { %914 = vrot.lane.b32.xlu2 %v2062_v2, %s1742_s21 }
 0xb7c   :  { %1053 = vrot.lane.b32.xlu0 %v2087_v36, %s1742_s21 }
 0xbd0   :  { %v1044_v0 = vpop.xlane.xlu2 %1043 }
 0xbd1   :  { %v1045_v55 = vsub.f32 %v1041_v60, %v1044_v0  ;;  %v1558_v0 = vld [vmem:[%s2225_s9 + $0x1] ss:$0 sm:$0xff] }
 0xbd3   :  { %v1046_v1 = vmul.f32 1.442695, %v1045_v55  ;;  %v911_v3 = vpop.xlane.xlu0 %910 }
 0xbd4   :  { %1603 = vrcp.f32 %v911_v3 }
 0xbd5   :  { %1605 = vpow2.f32 %v1046_v1 }
 0xbd8   :  { %v915_v4 = vpop.permute.xlu2 %914 }
 0xbd9   :  { %935 = vmatpush.msra.mxu3 %v915_v4 }
 0xbda   :  { %v1604_v5 = vpop.eup %1603 }
 0xbdb   :  { %v1606_v6 = vpop.eup %1605  ;;  %v913_v21 = vmul.f32 %v1604_v5, %v1602_v56  ;;  %v976_v7 = vpop.xlane.xlu0 %975 }
 0xbdc   :  { %v977_v8 = vsub.f32 %v973_v62, %v976_v7  ;;  %v1048_v9 = vsel %vm263_vm9, %v1606_v6, 0.0  ;;  %v1522_v7 = vld [vmem:[%s2228_s12 + $0x78] sm:$0xff] }
 0xbdd   :  { %1049 = vadd.xlane.f32.xlu1 %v1048_v9  ;;  %1500 = vmatmul.msk.f32.vlgmr.msra.gmra.mxu3 %vm263_vm9, %v913_v21  ;;  %v1520_v9 = vld [vmem:[%s2228_s12 + $0x68] sm:$0xff] }
 0xbde   :  { %v978_v2 = vmul.f32 1.442695, %v977_v8  ;;  %1270 = vmatpush.msra.mxu1 %v1522_v7  ;;  %v1521_v8 = vld [vmem:[%s2228_s12 + $0x70] sm:$0xff] }
 0xbe0   :  { %1607 = vpow2.f32 %v978_v2  ;;  %1271 = vmatpush.msra.mxu1 %v1521_v8  ;;  %v1519_v2 = vld [vmem:[%s2228_s12 + $0x60] sm:$0xff] }
 0xbe2   :  { %1272 = vmatpush.msra.mxu1 %v1520_v9 }
 0xbe4   :  { %1273 = vmatpush.msra.mxu1 %v1519_v2 }
 0xbe6   :  { %v1608_v11 = vpop.eup %1607 }
 0xbe7   :  { %v980_v12 = vsel %vm263_vm9, %v1608_v11, 0.0 }
 0xbe8   :  { %981 = vadd.xlane.f32.xlu1 %v980_v12 }
 0xbee   :  { %v1054_v13 = vpop.permute.xlu0 %1053 }
 0xbef   :  { %1074 = vmatpush.msrb.mxu3 %v1054_v13  ;;  %v1517_v13 = vld [vmem:[%s2228_s12 + $0x50] sm:$0xff] }
 0xc01   :  { %985 = vrot.lane.b32.xlu1 %v2087_v36, %s1741_s0 }
 0xc50   :  { %v1050_v14 = vpop.xlane.xlu1 %1049 }
 0xc51   :  { %1609 = vrcp.f32 %v1050_v14 }
 0xc57   :  { %v1610_v15 = vpop.eup %1609 }
 0xc58   :  { %v1052_v16 = vmul.f32 %v1610_v15, %v1606_v6  ;;  %v1516_v15 = vld [vmem:[%s2228_s12 + $0x48] sm:$0xff] }
 0xc5a   :  { %1506 = vmatmul.msk.f32.vlgmr.msrb.gmra.mxu3 %vm263_vm9, %v1052_v16 }
 0xc5b   :  { %v982_v17 = vpop.xlane.xlu1 %981 }
 0xc5c   :  { %1611 = vrcp.f32 %v982_v17  ;;  %v1559_v17 = vld [vmem:[%s2227_s11 + $0x1] ss:$0 sm:$0xff] }
 0xc60   :  { %v937_v39 = vpop.f32.mrf.mxu3 }
 0xc61   :  { %941 = vrot.lane.b32.xlu2 %v937_v39, %s1743_s10  ;;  %v1515_v39 = vld [vmem:[%s2228_s12 + $0x40] sm:$0xff] }
 0xc62   :  { %v1612_v18 = vpop.eup %1611 }
 0xc63   :  { %v984_v19 = vmul.f32 %v1612_v18, %v1608_v11  ;;  %v1518_v11 = vld [vmem:[%s2228_s12 + $0x58] sm:$0xff] }
 0xc64   :  { %1274 = vmatpush.msra.mxu1 %v1518_v11 }
 0xc66   :  { %1275 = vmatpush.msra.mxu1 %v1517_v13 }
 0xc68   :  { %1276 = vmatpush.msra.mxu1 %v1516_v15  ;;  %v1561_v15 = vld [vmem:[%s2230_s14 + $0x1] ss:$0 sm:$0xff] }
 0xc6a   :  { %1277 = vmatpush.msra.mxu1 %v1515_v39 }
 0xc73   :  { %v986_v20 = vpop.permute.xlu1 %985 }
 0xc74   :  { %1006 = vmatpush.msra.mxu2 %v986_v20 }
 0xc75   :  { %1503 = vmatmul.msk.f32.vlgmr.msra.gmra.mxu2 %vm263_vm9, %v984_v19 }
 0xc76   :  { %1213 = vmatpush.msrb.mxu2 %v1189_v47 }
 0xc78   :  { %1214 = vmatpush.msrb.mxu2 %v1188_v48 }
 0xc7a   :  { %1215 = vmatpush.msrb.mxu2 %v1187_v49 }
 0xc7c   :  { %1216 = vmatpush.msrb.mxu2 %v1186_v50 }
 0xcbb   :  { %v942_v26 = vpop.permute.xlu2 %941 }
 0xcbc   :  { %944 = vst.msk [vmem:[#allocation2] sm:$0xff] %vm373_vm10, %v942_v26 }
 0xcc3   :  { %v1084_v27 = vld [vmem:[#allocation2] sm:$0xff] }
 0xcc4   :  { %1508 = vmatmul.msk.f32.vlgmr.msra.gmra.mxu0 %vm133_vm0, %v1084_v27 }
 0xcdd   :  { %v1076_v29 = vpop.f32.mrf.mxu3 }
 0xcde   :  { %1080 = vrot.lane.b32.xlu0 %v1076_v29, %s1743_s10 }
 0xcf8   :  { %v1008_v30 = vpop.f32.mrf.mxu2 }
 0xcf9   :  { %1011 = vst.msk [vmem:[#allocation2 + $0x8] sm:$0xff] %vm235_vm8, %v1008_v30 }
 0xd41   :  { %v1119_v32 = vpop.f32.mrf.mxu0 }
 0xd42   :  { %v1120_v33 = vadd.f32 %v1556_v31, %v1119_v32 }
 0xd44   :  { %v1125_v34 = vadd.f32 %v1120_v33, %v2053_v59 }
 0xd46   :  { %v1131_v35 = vsel %vm133_vm0, %v1125_v34, 0.0 }
 0xd47   :  { %1132 = vadd.xlane.f32.xlu2 %v1131_v35 }
 0xd50   :  { %v1081_v36 = vpop.permute.xlu0 %1080 }
 0xd51   :  { %1083 = vst.msk [vmem:[#allocation2 + $0x8] sm:$0xff] %vm373_vm10, %v1081_v36 }
 0xd58   :  { %v1085_v37 = vld [vmem:[#allocation2 + $0x8] sm:$0xff] }
 0xd59   :  { %1509 = vmatmul.msk.f32.gmra.mxu0 %vm133_vm0, %v1085_v37 }
 0xdba   :  { %v1133_v38 = vpop.xlane.xlu2 %1132 }
 0xdbb   :  { %v1137_v40 = vmul.f32 %v1133_v38, %v1869_v10 }
 0xdbd   :  { %v1139_v41 = vsub.f32 %v1125_v34, %v1137_v40 }
 0xdbf   :  { %v1141_v42 = vmul.f32 %v1139_v41, %v1139_v41 }
 0xdc1   :  { %v1143_v43 = vsel %vm133_vm0, %v1141_v42, 0.0  ;;  %v1560_v42 = vld [vmem:[%s2229_s13 + $0x1] ss:$0 sm:$0xff] }
 0xdc2   :  { %1144 = vadd.xlane.f32.xlu1 %v1143_v43 }
 0xdd6   :  { %v1122_v44 = vpop.f32.mrf.mxu0 }
 0xdd7   :  { %v1123_v45 = vadd.f32 %v1556_v31, %v1122_v44 }
 0xdd9   :  { %v1126_v59 = vadd.f32 %v1123_v45, %v2081_v28 }
 0xddb   :  { %v1134_v46 = vsel %vm133_vm0, %v1126_v59, 0.0 }
 0xddc   :  { %1135 = vadd.xlane.f32.xlu0 %v1134_v46 }
 0xe35   :  { %v1145_v51 = vpop.xlane.xlu1 %1144 }
 0xe36   :  { %v1149_v52 = vmul.f32 %v1145_v51, %v1869_v10 }
 0xe38   :  { %v1151_v53 = vadd.f32 1e-12, %v1149_v52 }
 0xe3a   :  { %1613 = vrsqrt.f32 %v1151_v53  ;;  %vm1159_vm9 = vweird.f32 %v1151_v53 }
 0xe40   :  { %v1614_v60 = vpop.eup %1613 }
 0xe41   :  { %v1154_v54 = vmul.f32 %v1614_v60, %v1151_v53  ;;  %vm1160_vm8 = vweird.f32 %v1614_v60 }
 0xe42   :  { %vm1161_vm10 = vmor %vm1159_vm9, %vm1160_vm8 }
 0xe43   :  { %v1155_v56 = vmul.f32 %v1614_v60, %v1154_v54 }
 0xe45   :  { %v1156_v28 = vmul.f32 0.5, %v1155_v56 }
 0xe47   :  { %v1157_v57 = vsub.f32 1.5, %v1156_v28 }
 0xe49   :  { %v1158_v58 = vmul.f32 %v1614_v60, %v1157_v57 }
 0xe4b   :  { %v1162_v62 = vsel %vm1161_vm10, %v1614_v60, %v1158_v58 }
 0xe4c   :  { %v1173_v63 = vmul.f32 %v1162_v62, %v1139_v41 }
 0xe4e   :  { %v1178_v55 = vmul.f32 %v1557_v61, %v1173_v63 }
 0xe4f   :  { %v1136_v1 = vpop.xlane.xlu0 %1135 }
 0xe50   :  { %v1138_v3 = vmul.f32 %v1136_v1, %v1869_v10  ;;  %v1183_v4 = vadd.f32 %v1558_v0, %v1178_v55 }
 0xe52   :  { %v1140_v5 = vsub.f32 %v1126_v59, %v1138_v3  ;;  %1513 = vmatmul.msk.f32.vlgmr.msrb.gmra.mxu2 %vm133_vm0, %v1183_v4  ;;  %v1348_v3 = vld [vmem:[#allocation7 + $0x18] sm:$0xff] }
 0xe53   :  { %1365 = vmatpush.msra.mxu3 %v1348_v3  ;;  %1423 = vmatpush.msrb.mxu0 %v1348_v3 }
 0xe54   :  { %v1142_v6 = vmul.f32 %v1140_v5, %v1140_v5 }
 0xe56   :  { %v1146_v21 = vsel %vm133_vm0, %v1142_v6, 0.0  ;;  %v1345_v6 = vld [vmem:[#allocation7] sm:$0xff] }
 0xe57   :  { %1147 = vadd.xlane.f32.xlu2 %v1146_v21 }
 0xeca   :  { %v1148_v12 = vpop.xlane.xlu2 %1147 }
 0xecb   :  { %v1150_v14 = vmul.f32 %v1148_v12, %v1869_v10 }
 0xecd   :  { %v1152_v16 = vadd.f32 1e-12, %v1150_v14 }
 0xecf   :  { %1615 = vrsqrt.f32 %v1152_v16  ;;  %vm1169_vm13 = vweird.f32 %v1152_v16 }
 0xed5   :  { %v1616_v18 = vpop.eup %1615  ;;  %v1218_v19 = vpop.f32.mrf.mxu2 }
 0xed6   :  { %v1164_v20 = vmul.f32 %v1616_v18, %v1152_v16  ;;  %v1219_v22 = vadd.f32 %v1559_v17, %v1218_v19  ;;  %vm1170_vm12 = vweird.f32 %v1616_v18 }
 0xed7   :  { %vm1171_vm15 = vmor %vm1169_vm13, %vm1170_vm12 }
 0xed8   :  { %v1165_v23 = vmul.f32 %v1616_v18, %v1164_v20  ;;  %v1224_v24 = vmul.f32 %v1219_v22, %v1219_v22 }
 0xeda   :  { %v1166_v25 = vmul.f32 0.5, %v1165_v23  ;;  %v1226_v26 = vmul.f32 %v1224_v24, %v1219_v22 }
 0xedc   :  { %v1167_v27 = vsub.f32 1.5, %v1166_v25  ;;  %v1228_v29 = vmul.f32 0.044715, %v1226_v26  ;;  %v1377_v26 = vld [vmem:[#allocation8 + $0x18] sm:$0xff] }
 0xedd   :  { %1452 = vmatpush.msra.mxu2 %v1377_v26 }
 0xede   :  { %v1168_v30 = vmul.f32 %v1616_v18, %v1167_v27  ;;  %v1230_v31 = vadd.f32 %v1228_v29, %v1219_v22  ;;  %v1376_v27 = vld [vmem:[#allocation8 + $0x10] sm:$0xff]  ;;  %v1375_v29 = vld [vmem:[#allocation8 + $0x8] sm:$0xff] }
 0xedf   :  { %1453 = vmatpush.msra.mxu2 %v1376_v27 }
 0xee0   :  { %v1172_v32 = vsel %vm1171_vm15, %v1616_v18, %v1168_v30  ;;  %v1232_v33 = vmul.f32 0.7978846, %v1230_v31  ;;  %v1374_v30 = vld [vmem:[#allocation8] sm:$0xff] }
 0xee1   :  { %v1174_v34 = vmul.f32 %v1172_v32, %v1140_v5  ;;  %v1346_v5 = vld [vmem:[#allocation7 + $0x8] sm:$0xff]  ;;  %1454 = vmatpush.msra.mxu2 %v1375_v29 }
 0xee2   :  { %1617 = vtanh.f32 %v1232_v33 }
 0xee3   :  { %v1179_v35 = vmul.f32 %v1557_v61, %v1174_v34  ;;  %1455 = vmatpush.msra.mxu2 %v1374_v30  ;;  %v1349_v34 = vld [vmem:[%s2233_s17] sm:$0x1] }
 0xee5   :  { %v1184_v36 = vadd.f32 %v1558_v0, %v1179_v35 }
 0xee7   :  { %1514 = vmatmul.msk.f32.gmra.mxu2 %vm133_vm0, %v1184_v36 }
 0xee8   :  { %v1618_v37 = vpop.eup %1617 }
 0xee9   :  { %v1236_v38 = vadd.f32 1.0, %v1618_v37 }
 0xeeb   :  { %v1238_v40 = vmul.f32 0.5, %v1236_v38 }
 0xeed   :  { %v1240_v41 = vmul.f32 %v1238_v40, %v1219_v22 }
 0xeef   :  { %1524 = vmatmul.msk.f32.vlgmr.msra.gmra.mxu1 %vm679_vm14, %v1240_v41 }
 0xf6a   :  { %v1221_v43 = vpop.f32.mrf.mxu2 }
 0xf6b   :  { %v1222_v44 = vadd.f32 %v1559_v17, %v1221_v43  ;;  %v1562_v17 = vld [vmem:[%s2231_s15 + $0x1] ss:$0 sm:$0xff] }
 0xf6c   :  { %v1279_v45 = vpop.f32.mrf.mxu1 }
 0xf6d   :  { %v1225_v59 = vmul.f32 %v1222_v44, %v1222_v44  ;;  %v1280_v46 = vadd.f32 %v1560_v42, %v1279_v45 }
 0xf6f   :  { %v1227_v47 = vmul.f32 %v1225_v59, %v1222_v44  ;;  %v1285_v48 = vadd.f32 %v1280_v46, %v1183_v4  ;;  %v1347_v4 = vld [vmem:[#allocation7 + $0x10] sm:$0xff] }
 0xf70   :  { %1366 = vmatpush.msra.mxu3 %v1347_v4  ;;  %1424 = vmatpush.msrb.mxu0 %v1347_v4 }
 0xf71   :  { %v1229_v49 = vmul.f32 0.044715, %v1227_v47  ;;  %v1291_v50 = vsel %vm133_vm0, %v1285_v48, 0.0  ;;  %v1378_v47 = vld [vmem:[%s2235_s19] sm:$0x1] }
 0xf72   :  { %1292 = vadd.xlane.f32.xlu0 %v1291_v50  ;;  %1367 = vmatpush.msra.mxu3 %v1346_v5 }
 0xf73   :  { %v1231_v51 = vadd.f32 %v1229_v49, %v1222_v44  ;;  %1425 = vmatpush.msrb.mxu0 %v1346_v5  ;;  %v1407_v49 = vld [vmem:[%s2233_s17] sm:$0x1] }
 0xf74   :  { %1368 = vmatpush.msra.mxu3 %v1345_v6 }
 0xf75   :  { %v1233_v52 = vmul.f32 0.7978846, %v1231_v51  ;;  %1426 = vmatpush.msrb.mxu0 %v1345_v6 }
 0xf76   :  { %1394 = vmatpush.msrb.mxu3 %v1377_v26 }
 0xf77   :  { %1619 = vtanh.f32 %v1233_v52 }
 0xf78   :  { %1395 = vmatpush.msrb.mxu3 %v1376_v27 }
 0xf7a   :  { %1396 = vmatpush.msrb.mxu3 %v1375_v29 }
 0xf7c   :  { %1397 = vmatpush.msrb.mxu3 %v1374_v30 }
 0xf7d   :  { %v1620_v53 = vpop.eup %1619 }
 0xf7e   :  { %v1237_v60 = vadd.f32 1.0, %v1620_v53 }
 0xf80   :  { %v1239_v54 = vmul.f32 0.5, %v1237_v60  ;;  %v1436_v60 = vld [vmem:[%s2235_s19] sm:$0x1] }
 0xf82   :  { %v1241_v56 = vmul.f32 %v1239_v54, %v1222_v44 }
 0xf84   :  { %1525 = vmatmul.msk.f32.gmra.mxu1 %vm679_vm14, %v1241_v56 }
 0xfe5   :  { %v1293_v28 = vpop.xlane.xlu0 %1292 }
 0xfe6   :  { %v1297_v57 = vmul.f32 %v1293_v28, %v1869_v10 }
 0xfe8   :  { %v1299_v58 = vsub.f32 %v1285_v48, %v1297_v57 }
 0xfea   :  { %v1301_v61 = vmul.f32 %v1299_v58, %v1299_v58 }
 0xfec   :  { %v1303_v62 = vsel %vm133_vm0, %v1301_v61, 0.0 }
 0xfed   :  { %1304 = vadd.xlane.f32.xlu1 %v1303_v62 }
0x1001   :  { %v1282_v63 = vpop.f32.mrf.mxu1 }
0x1002   :  { %v1283_v0 = vadd.f32 %v1560_v42, %v1282_v63 }
0x1004   :  { %v1286_v55 = vadd.f32 %v1283_v0, %v1184_v36 }
0x1006   :  { %v1294_v1 = vsel %vm133_vm0, %v1286_v55, 0.0 }
0x1007   :  { %1295 = vadd.xlane.f32.xlu2 %v1294_v1 }
0x1060   :  { %v1305_v21 = vpop.xlane.xlu1 %1304 }
0x1061   :  { %v1309_v7 = vmul.f32 %v1305_v21, %v1869_v10 }
0x1063   :  { %v1311_v8 = vadd.f32 1e-12, %v1309_v7 }
0x1065   :  { %1621 = vrsqrt.f32 %v1311_v8  ;;  %vm1319_vm1 = vweird.f32 %v1311_v8 }
0x106b   :  { %v1622_v9 = vpop.eup %1621 }
0x106c   :  { %v1314_v2 = vmul.f32 %v1622_v9, %v1311_v8  ;;  %vm1320_vm14 = vweird.f32 %v1622_v9 }
0x106d   :  { %vm1321_vm2 = vmor %vm1319_vm1, %vm1320_vm14 }
0x106e   :  { %v1315_v11 = vmul.f32 %v1622_v9, %v1314_v2 }
0x1070   :  { %v1316_v12 = vmul.f32 0.5, %v1315_v11 }
0x1072   :  { %v1317_v13 = vsub.f32 1.5, %v1316_v12 }
0x1074   :  { %v1318_v14 = vmul.f32 %v1622_v9, %v1317_v13 }
0x1076   :  { %v1322_v16 = vsel %vm1321_vm2, %v1622_v9, %v1318_v14 }
0x1077   :  { %v1333_v39 = vmul.f32 %v1322_v16, %v1299_v58 }
0x1079   :  { %v1338_v18 = vmul.f32 %v1561_v15, %v1333_v39 }
0x107a   :  { %v1296_v19 = vpop.xlane.xlu2 %1295 }
0x107b   :  { %v1298_v20 = vmul.f32 %v1296_v19, %v1869_v10  ;;  %v1343_v22 = vadd.f32 %v1562_v17, %v1338_v18 }
0x107d   :  { %v1300_v23 = vsub.f32 %v1286_v55, %v1298_v20  ;;  %1528 = vmatmul.msk.f32.vlgmr.msra.gmra.mxu3 %vm133_vm0, %v1343_v22 }
0x107f   :  { %v1302_v24 = vmul.f32 %v1300_v23, %v1300_v23 }
0x1081   :  { %v1306_v25 = vsel %vm133_vm0, %v1302_v24, 0.0 }
0x1082   :  { %1307 = vadd.xlane.f32.xlu0 %v1306_v25 }
0x10f5   :  { %v1308_v31 = vpop.xlane.xlu0 %1307 }
0x10f6   :  { %v1310_v32 = vmul.f32 %v1308_v31, %v1869_v10 }
0x10f8   :  { %v1312_v33 = vadd.f32 1e-12, %v1310_v32 }
0x10fa   :  { %1623 = vrsqrt.f32 %v1312_v33  ;;  %vm1329_vm4 = vweird.f32 %v1312_v33 }
0x1100   :  { %v1624_v35 = vpop.eup %1623  ;;  %v1370_v36 = vpop.f32.mrf.mxu3 }
0x1101   :  { %v1324_v37 = vmul.f32 %v1624_v35, %v1312_v33  ;;  %v1371_v38 = vadd.f32 %v1370_v36, %v1349_v34  ;;  %vm1330_vm3 = vweird.f32 %v1624_v35 }
0x1102   :  { %vm1331_vm5 = vmor %vm1329_vm4, %vm1330_vm3 }
0x1103   :  { %v1325_v40 = vmul.f32 %v1624_v35, %v1324_v37  ;;  %1625 = vtanh.f32 %v1371_v38 }
0x1105   :  { %v1326_v41 = vmul.f32 0.5, %v1325_v40 }
0x1107   :  { %v1327_v42 = vsub.f32 1.5, %v1326_v41 }
0x1109   :  { %v1626_v43 = vpop.eup %1625  ;;  %v1328_v44 = vmul.f32 %v1624_v35, %v1327_v42 }
0x110a   :  { %1529 = vmatmul.msk.f32.vlgmr.msrb.gmra.mxu3 %vm133_vm0, %v1626_v43 }
0x110b   :  { %v1332_v10 = vsel %vm1331_vm5, %v1624_v35, %v1328_v44 }
0x110c   :  { %v1334_v45 = vmul.f32 %v1332_v10, %v1300_v23 }
0x110e   :  { %v1339_v59 = vmul.f32 %v1561_v15, %v1334_v45 }
0x1110   :  { %v1344_v46 = vadd.f32 %v1562_v17, %v1339_v59 }
0x1112   :  { %1530 = vmatmul.msk.f32.vlgmr.msrb.gmra.mxu0 %vm133_vm0, %v1344_v46 }
0x118d   :  { %v1399_v48 = vpop.f32.mrf.mxu3 }
0x118e   :  { %v1400_v50 = vadd.f32 %v1399_v48, %v1378_v47 }
0x118f   :  { %v1428_v51 = vpop.f32.mrf.mxu0 }
0x1190   :  { %1402 = vst [vmem:[%s2236_s20] sm:$0x1] %v1400_v50  ;;  %v1429_v52 = vadd.f32 %v1428_v51, %v1407_v49 }
0x1192   :  { %1627 = vtanh.f32 %v1429_v52 }
0x1198   :  { %v1628_v53 = vpop.eup %1627 }
0x1199   :  { %1531 = vmatmul.msk.f32.vlgmr.msra.gmra.mxu2 %vm133_vm0, %v1628_v53 }
0x121c   :  { %v1457_v54 = vpop.f32.mrf.mxu2 }
0x121d   :  { %v1458_v56 = vadd.f32 %v1457_v54, %v1436_v60 }
0x121f   :  { %1460 = vst [vmem:[%s2236_s20 + $0x1] sm:$0x1] %v1458_v56 }
0x1220   :  { %1465 = vsyncpa [#allocation4], 1 }
0x1221   :  { %1466 = vsyncpa [#allocation6], 1 }
0x1222   :  { %1467 = vsyncpa [#allocation9], 1 }

</bundles_post_ra>
